<compile_context>
chip_gen: v7x
topology: tpu7x:2x2x1
jax: 0.10.0
libtpu: 0.0.40
codegen_flags: <defaults>
</compile_context>

<pallas_src>
import functools
import math

import jax
import jax.numpy as jnp
from jax.experimental import pallas as pl
from jax.experimental.pallas import tpu as pltpu


_VMEM_LIMIT_BYTES = 48 * 1024 * 1024   # per-core; fits v7x (64 MiB/TC) and v5e/v6e (128 MiB)
_TILE_VMEM_BUDGET = 20 * 1024 * 1024   # what the auto tile-sizer fills with per-step buffers
_MODE_CACHE = {}                       # (C, pred dtype, label dtype) -> (mode, cast_labels)


# --------------------------------------------------------------------------------------
# Kernel: one (split, tile) grid step producing per-split per-class partials.
# --------------------------------------------------------------------------------------
def _wce_partials_kernel(pred_ref, label_ref, cnt_out_ref, nll_out_ref,
                         cnt_acc_ref, nll_acc_ref, *,
                         n_total, tile_n, tiles_per_split, relayout):
    """Grid = (n_splits ["parallel"], tiles_per_split ["arbitrary"]).

    pred_ref   : (tile_n, C) native slab          (relayout != None)
                 or (C, tile_n) pre-transposed    (relayout is None)
    label_ref  : (1, tile_n) integer labels (lane-dense)
    cnt_out_ref: (1, C, 1) per-split per-class counts   (written on last tile)
    nll_out_ref: (1, C, 1) per-split per-class sum NLL   (written on last tile)
    cnt_acc_ref, nll_acc_ref: (C, tile_n) f32 VMEM accumulators (per split)
    """
    s = pl.program_id(0)           # TensorCore split
    i = pl.program_id(1)           # tile index within the split (reduction axis)

    @pl.when(i == 0)
    def _init():
        cnt_acc_ref[...] = jnp.zeros_like(cnt_acc_ref)
        nll_acc_ref[...] = jnp.zeros_like(nll_acc_ref)

    # ---- bring the logits tile into the dense compute layout: (C, tile_n) f32 ----
    if relayout is None:
        pred = pred_ref[...].astype(jnp.float32)                 # already (C, tile_n)
    else:
        x = pred_ref[...].astype(jnp.float32)                    # (tile_n, C) native slab
        if relayout == "einshape":
            pred = pltpu.einshape("nc->cn", x)                   # minor-dim swap on the XLU
        else:
            pred = jnp.transpose(x)
    c = pred.shape[0]

    label = label_ref[...].astype(jnp.int32)                     # (1, tile_n)

    # Ragged-tail / overhang mask: global sample index of every lane of this tile.
    # The index_map clamps the *block* index to stay in bounds; the UNclamped index is
    # used here so re-read (clamped) tiles and garbage tail lanes contribute exactly 0.
    tile_idx = s * tiles_per_split + i
    pos = tile_idx * tile_n + jax.lax.broadcasted_iota(jnp.int32, (1, tile_n), 1)
    valid = pos < n_total                                        # (1, tile_n)

    class_ids = jax.lax.broadcasted_iota(jnp.int32, (c, 1), 0)   # (C, 1) -- cheap, broadcast
    mask = (label == class_ids) & valid                          # (C, tile_n) bool

    # Numerically-stable per-sample log-sum-exp (sublane reduction over classes).
    m = jnp.max(pred, axis=0, keepdims=True)                     # (1, tile_n)
    lse = jnp.log(jnp.sum(jnp.exp(pred - m), axis=0, keepdims=True)) + m

    # Single-pass per-class accumulation (selects, no one-hot float multiplies).
    cnt_acc_ref[...] += jnp.where(mask, 1.0, 0.0)
    nll_acc_ref[...] += jnp.where(mask, lse - pred, 0.0)

    @pl.when(i == pl.num_programs(1) - 1)
    def _emit():
        cnt_out_ref[0, :, :] = jnp.sum(cnt_acc_ref[...], axis=1, keepdims=True)   # (C, 1)
        nll_out_ref[0, :, :] = jnp.sum(nll_acc_ref[...], axis=1, keepdims=True)   # (C, 1)


# --------------------------------------------------------------------------------------
# Wrapper helpers
# --------------------------------------------------------------------------------------
def _auto_tile_n(n, c, pred_itemsize, label_itemsize, native_layout):
    """Largest lane-aligned tile_n whose per-step VMEM footprint fits the budget."""
    c_lane = ((c + 127) // 128) * 128     # lane-padded C (native-layout input tiles)
    c_sub = ((c + 7) // 8) * 8            # sublane-padded C (transposed working layout)
    if native_layout:
        per_lane = 2 * c_lane * pred_itemsize + 4 * c_sub   # dbl-buffered slab + f32 relayout temp
    else:
        per_lane = 2 * c_sub * pred_itemsize                # dbl-buffered (C, tile_n) slab
    per_lane += 2 * 4 * c_sub                               # two f32 accumulators
    per_lane += 2 * label_itemsize                          # dbl-buffered labels
    t = _TILE_VMEM_BUDGET // max(1, per_lane)
    return max(128, min(65536, (t // 128) * 128))


def _run(pred, label, num_classes, *, tile_n, n_splits, mode, cast_labels):
    n, c = pred.shape
    assert c == num_classes
    native = mode != "pretransposed"
    relayout = {"native_einshape": "einshape",
                "native_transpose": "transpose",
                "pretransposed": None}[mode]

    # Labels: lane-dense (1, N); keep narrow int dtypes on the wire when possible.
    narrow_ok = (jnp.dtype(jnp.int8), jnp.dtype(jnp.int16), jnp.dtype(jnp.int32))
    if cast_labels or jnp.dtype(label.dtype) not in narrow_ok:
        label = label.astype(jnp.int32)
    label2d = label.reshape(1, n)                               # free view of the 1-D labels

    if tile_n is None:
        tile_n = _auto_tile_n(n, c, jnp.dtype(pred.dtype).itemsize,
                              jnp.dtype(label2d.dtype).itemsize, native)
    tile_n = max(128, (int(tile_n) // 128) * 128)
    tile_n = min(tile_n, max(128, ((n + 127) // 128) * 128))    # never wider than the problem

    total_tiles = -(-n // tile_n)
    n_splits = max(1, min(int(n_splits), total_tiles))
    tps = -(-total_tiles // n_splits)
    last_tile = total_tiles - 1

    def _tile_of(s, i):   # clamp so the DMA never goes fully out of bounds
        return jnp.minimum(s * tps + i, last_tile)

    if native:
        pred_in = pred                                          # (N, C), no extra HBM pass
        pred_spec = pl.BlockSpec((tile_n, c), lambda s, i: (_tile_of(s, i), 0))
    else:
        pred_in = jnp.transpose(pred)                           # (C, N): fallback's extra pass
        pred_spec = pl.BlockSpec((c, tile_n), lambda s, i: (0, _tile_of(s, i)))
    label_spec = pl.BlockSpec((1, tile_n), lambda s, i: (0, _tile_of(s, i)))
    out_spec = pl.BlockSpec((1, c, 1), lambda s, i: (s, 0, 0))

    kernel = functools.partial(_wce_partials_kernel, n_total=n, tile_n=tile_n,
                               tiles_per_split=tps, relayout=relayout)

    cnt_parts, nll_parts = pl.pallas_call(
        kernel,
        out_shape=(jax.ShapeDtypeStruct((n_splits, c, 1), jnp.float32),
                   jax.ShapeDtypeStruct((n_splits, c, 1), jnp.float32)),
        grid=(n_splits, tps),
        in_specs=[pred_spec, label_spec],
        out_specs=(out_spec, out_spec),
        scratch_shapes=[pltpu.VMEM((c, tile_n), jnp.float32),
                        pltpu.VMEM((c, tile_n), jnp.float32)],
        compiler_params=pltpu.CompilerParams(
            dimension_semantics=("parallel", "arbitrary"),
            vmem_limit_bytes=_VMEM_LIMIT_BYTES),
    )(pred_in, label2d)

    # Tiny epilogue in plain JAX (per review: weight/normalize/divide outside the kernel).
    counts = jnp.sum(cnt_parts[:, :, 0], axis=0)                # (C,)
    nll_sum = jnp.sum(nll_parts[:, :, 0], axis=0)               # (C,)
    v = jnp.float32(n)                                          # V = label.size(0)
    weight = jnp.where(counts > 0, (v - counts) / v, 0.0)
    return jnp.sum(weight * nll_sum) / jnp.sum(weight * counts)


def _candidate_modes(label_dtype):
    base = ["native_einshape", "native_transpose", "pretransposed"]
    cands = [(m, False) for m in base]
    if jnp.dtype(label_dtype) != jnp.dtype(jnp.int32):
        cands += [(m, True) for m in base]
    return cands


def _pick_mode(num_classes, pred_dtype, label_dtype):
    """One-time feature probe: pick the first mode Mosaic lowers *and* that matches a
    tiny pure-JAX reference.  Cached per (C, dtypes)."""
    key = (int(num_classes), jnp.dtype(pred_dtype).name, jnp.dtype(label_dtype).name)
    if key in _MODE_CACHE:
        return _MODE_CACHE[key]
    kp, kl = jax.random.split(jax.random.PRNGKey(42))
    n_probe = 200                      # two 128-lane tiles -> exercises the ragged tail
    pred = jax.random.normal(kp, (n_probe, num_classes), jnp.float32).astype(pred_dtype)
    label = jax.random.randint(kl, (n_probe,), 0, num_classes, jnp.int32).astype(label_dtype)
    want = float(_reference(pred, label, num_classes))
    tol = 5e-2 if jnp.dtype(pred_dtype).itemsize < 4 else 1e-3
    chosen = ("pretransposed", True)
    for mode, cast in _candidate_modes(label_dtype):
        try:
            got = float(jax.block_until_ready(
                _run(pred, label, num_classes, tile_n=128, n_splits=2,
                     mode=mode, cast_labels=cast)))
        except Exception:
            continue
        if math.isfinite(got) and abs(got - want) <= max(tol, tol * abs(want)):
            chosen = (mode, cast)
            break
    _MODE_CACHE[key] = chosen
    return chosen


def my_criterion(pred, label, num_classes, *, tile_n=None, n_splits=2, mode=None):
    """Forward pass of MyCriterion.  pred: (N, C) logits (f32 or bf16); label: (N,) ints."""
    if mode is None:
        mode, cast = _pick_mode(num_classes, pred.dtype, label.dtype)
    else:
        cast = False
    try:
        return _run(pred, label, num_classes, tile_n=tile_n, n_splits=n_splits,
                    mode=mode, cast_labels=cast)
    except Exception:
        if (mode, cast) == ("pretransposed", True):
            raise
        # guaranteed-lowering fallback: wrapper transpose (no pad), i32 labels
        return _run(pred, label, num_classes, tile_n=tile_n, n_splits=n_splits,
                    mode="pretransposed", cast_labels=True)


def _reference(pred, label, num_classes):
    """Pure-JAX reference of the PyTorch module."""
    n = pred.shape[0]
    lab = label.astype(jnp.int32)
    counts = jnp.bincount(lab, length=num_classes).astype(jnp.float32)
    weight = jnp.where(counts > 0, (n - counts) / n, 0.0)
    logp = jax.nn.log_softmax(pred.astype(jnp.float32), axis=-1)
    nll = -jnp.take_along_axis(logp, lab[:, None], axis=1)[:, 0]
    w = weight[lab]
    return jnp.sum(w * nll) / jnp.sum(w)


# --------------------------------------------------------------------------------------
# Demo / self-check
# --------------------------------------------------------------------------------------
if __name__ == "__main__":
    num_classes = 10
    n = 300                                    # not a multiple of the tile -> ragged tail

    key = jax.random.PRNGKey(0)
    kp, kl = jax.random.split(key)
    pred = jax.random.normal(kp, (n, num_classes), dtype=jnp.float32)
    label = jax.random.randint(kl, (n,), 0, num_classes, dtype=jnp.int32)

    ref = _reference(pred, label, num_classes)

    # 1) main path: native (N, C) logits, small tile to exercise streaming accumulation,
    #    two TensorCore splits (harmless on 1-core chips), ragged last tile masked.
    loss = my_criterion(pred, label, num_classes, tile_n=128, n_splits=2)
    jax.block_until_ready(loss)
    assert jnp.allclose(loss, ref, rtol=1e-4, atol=1e-4), (loss, ref)

    # 2) explicit fallback path (review option (b): pre-transposed input, no pad).
    loss_fb = my_criterion(pred, label, num_classes, tile_n=128, n_splits=2,
                           mode="pretransposed")
    jax.block_until_ready(loss_fb)
    assert jnp.allclose(loss_fb, ref, rtol=1e-4, atol=1e-4), (loss_fb, ref)

    # 3) narrow wire types + auto tile sizing: bf16 logits, int16 labels.
    loss_lp = my_criterion(pred.astype(jnp.bfloat16), label.astype(jnp.int16), num_classes)
    jax.block_until_ready(loss_lp)
    assert jnp.allclose(loss_lp, ref, rtol=5e-2, atol=5e-2), (loss_lp, ref)

    print("KERNEL_OK")
</pallas_src>

<mosaic_0001>
module attributes {stable_mosaic.version = 11 : i64} {
  func.func @_wce_partials_kernel(%arg0: i32, %arg1: i32, %arg2: memref<128x10xf32, #tpu.memory_space<vmem>>, %arg3: memref<1x128xi32, #tpu.memory_space<vmem>>, %arg4: memref<1x10x1xf32, #tpu.memory_space<vmem>>, %arg5: memref<1x10x1xf32, #tpu.memory_space<vmem>>, %arg6: memref<10x128xf32, #tpu.memory_space<vmem>>, %arg7: memref<10x128xf32, #tpu.memory_space<vmem>>) attributes {dimension_semantics = [#tpu.dimension_semantics<parallel>, #tpu.dimension_semantics<arbitrary>], iteration_bounds = array<i64: 2, 1>, scalar_prefetch = 0 : i64, scratch_operands = 2 : i64, tpu.core_type = #tpu.core_type<tc>, window_params = [{transform_indices = @transform_0, window_bounds = array<i64: 128, 10>}, {transform_indices = @transform_1, window_bounds = array<i64: 1, 128>}, {transform_indices = @transform_2, window_bounds = array<i64: 1, 10, 1>}, {transform_indices = @transform_3, window_bounds = array<i64: 1, 10, 1>}]} {
    %c0_i32 = arith.constant 0 : i32
    %0 = arith.cmpi eq, %arg1, %c0_i32 : i32
    %1 = arith.extui %0 : i1 to i32
    %c0_i32_0 = arith.constant 0 : i32
    %2 = arith.cmpi ne, %1, %c0_i32_0 : i32
    scf.if %2 {
      %cst_18 = arith.constant 0.000000e+00 : f32
      %45 = vector.broadcast %cst_18 : f32 to vector<10x128xf32>
      %c0_19 = arith.constant 0 : index
      %c0_20 = arith.constant 0 : index
      %46 = vector.load %arg6[%c0_19, %c0_20] : memref<10x128xf32, #tpu.memory_space<vmem>>, vector<10x128xf32>
      tpu.vector_store %arg6[%c0_19, %c0_20], %45 {strides = array<i32>} : memref<10x128xf32, #tpu.memory_space<vmem>>, vector<10x128xf32>,
      %cst_21 = arith.constant 0.000000e+00 : f32
      %47 = vector.broadcast %cst_21 : f32 to vector<10x128xf32>
      %c0_22 = arith.constant 0 : index
      %c0_23 = arith.constant 0 : index
      %48 = vector.load %arg7[%c0_22, %c0_23] : memref<10x128xf32, #tpu.memory_space<vmem>>, vector<10x128xf32>
      tpu.vector_store %arg7[%c0_22, %c0_23], %47 {strides = array<i32>} : memref<10x128xf32, #tpu.memory_space<vmem>>, vector<10x128xf32>,
    } else {
    }
    %c0 = arith.constant 0 : index
    %c0_1 = arith.constant 0 : index
    %3 = vector.load %arg2[%c0, %c0_1] : memref<128x10xf32, #tpu.memory_space<vmem>>, vector<128x10xf32>
    %4 = tpu.transpose %3, [1, 0] : vector<128x10xf32> -> vector<10x128xf32>
    %c0_2 = arith.constant 0 : index
    %c0_3 = arith.constant 0 : index
    %5 = vector.load %arg3[%c0_2, %c0_3] : memref<1x128xi32, #tpu.memory_space<vmem>>, vector<1x128xi32>
    %c1_i32 = arith.constant 1 : i32
    %6 = arith.muli %arg0, %c1_i32 : i32
    %7 = arith.addi %6, %arg1 : i32
    %c128_i32 = arith.constant 128 : i32
    %8 = arith.muli %7, %c128_i32 : i32
    %9 = tpu.iota {dimensions = array<i32: 1>} : vector<1x128xi32>
    %10 = vector.broadcast %8 : i32 to vector<1x128xi32>
    %11 = arith.addi %10, %9 : vector<1x128xi32>
    %c200_i32 = arith.constant 200 : i32
    %12 = vector.broadcast %c200_i32 : i32 to vector<1x128xi32>
    %13 = arith.cmpi slt, %11, %12 : vector<1x128xi32>
    %14 = tpu.iota {dimensions = array<i32: 0>} : vector<10x1xi32>
    %15 = vector.broadcast %5 : vector<1x128xi32> to vector<10x128xi32>
    %16 = vector.broadcast %14 : vector<10x1xi32> to vector<10x128xi32>
    %17 = arith.cmpi eq, %15, %16 : vector<10x128xi32>
    %18 = vector.broadcast %13 : vector<1x128xi1> to vector<10x128xi1>
    %19 = arith.andi %17, %18 : vector<10x128xi1>
    %cst = arith.constant dense<0xFF800000> : vector<128xf32>
    %20 = vector.multi_reduction <maximumf>, %4, %cst [0] : vector<10x128xf32> to vector<128xf32>
    %21 = vector.shape_cast %20 : vector<128xf32> to vector<1x128xf32>
    %22 = vector.broadcast %21 : vector<1x128xf32> to vector<10x128xf32>
    %23 = arith.subf %4, %22 : vector<10x128xf32>
    %24 = math.exp %23 : vector<10x128xf32>
    %cst_4 = arith.constant dense<0.000000e+00> : vector<128xf32>
    %25 = vector.multi_reduction <add>, %24, %cst_4 [0] : vector<10x128xf32> to vector<128xf32>
    %26 = vector.shape_cast %25 : vector<128xf32> to vector<1x128xf32>
    %27 = math.log %26 : vector<1x128xf32>
    %28 = arith.addf %27, %21 : vector<1x128xf32>
    %c0_5 = arith.constant 0 : index
    %c0_6 = arith.constant 0 : index
    %29 = vector.load %arg6[%c0_5, %c0_6] : memref<10x128xf32, #tpu.memory_space<vmem>>, vector<10x128xf32>
    %cst_7 = arith.constant 1.000000e+00 : f32
    %cst_8 = arith.constant 0.000000e+00 : f32
    %30 = vector.broadcast %cst_7 : f32 to vector<10x128xf32>
    %31 = vector.broadcast %cst_8 : f32 to vector<10x128xf32>
    %32 = arith.select %19, %30, %31 : vector<10x128xi1>, vector<10x128xf32>
    %33 = arith.addf %29, %32 : vector<10x128xf32>
    %c0_9 = arith.constant 0 : index
    %c0_10 = arith.constant 0 : index
    %34 = vector.load %arg6[%c0_9, %c0_10] : memref<10x128xf32, #tpu.memory_space<vmem>>, vector<10x128xf32>
    tpu.vector_store %arg6[%c0_9, %c0_10], %33 {strides = array<i32>} : memref<10x128xf32, #tpu.memory_space<vmem>>, vector<10x128xf32>,
    %c0_11 = arith.constant 0 : index
    %c0_12 = arith.constant 0 : index
    %35 = vector.load %arg7[%c0_11, %c0_12] : memref<10x128xf32, #tpu.memory_space<vmem>>, vector<10x128xf32>
    %36 = vector.broadcast %28 : vector<1x128xf32> to vector<10x128xf32>
    %37 = arith.subf %36, %4 : vector<10x128xf32>
    %cst_13 = arith.constant 0.000000e+00 : f32
    %38 = vector.broadcast %cst_13 : f32 to vector<10x128xf32>
    %39 = arith.select %19, %37, %38 : vector<10x128xi1>, vector<10x128xf32>
    %40 = arith.addf %35, %39 : vector<10x128xf32>
    %c0_14 = arith.constant 0 : index
    %c0_15 = arith.constant 0 : index
    %41 = vector.load %arg7[%c0_14, %c0_15] : memref<10x128xf32, #tpu.memory_space<vmem>>, vector<10x128xf32>
    tpu.vector_store %arg7[%c0_14, %c0_15], %40 {strides = array<i32>} : memref<10x128xf32, #tpu.memory_space<vmem>>, vector<10x128xf32>,
    %c0_i32_16 = arith.constant 0 : i32
    %42 = arith.cmpi eq, %arg1, %c0_i32_16 : i32
    %43 = arith.extui %42 : i1 to i32
    %c0_i32_17 = arith.constant 0 : i32
    %44 = arith.cmpi ne, %43, %c0_i32_17 : i32
    scf.if %44 {
      %c0_18 = arith.constant 0 : index
      %c0_19 = arith.constant 0 : index
      %45 = vector.load %arg6[%c0_18, %c0_19] : memref<10x128xf32, #tpu.memory_space<vmem>>, vector<10x128xf32>
      %cst_20 = arith.constant dense<0.000000e+00> : vector<10xf32>
      %46 = vector.multi_reduction <add>, %45, %cst_20 [1] : vector<10x128xf32> to vector<10xf32>
      %47 = vector.shape_cast %46 : vector<10xf32> to vector<10x1xf32>
      %c0_21 = arith.constant 0 : index
      %c0_22 = arith.constant 0 : index
      %c0_23 = arith.constant 0 : index
      %48 = vector.load %arg4[%c0_21, %c0_22, %c0_23] : memref<1x10x1xf32, #tpu.memory_space<vmem>>, vector<1x10x1xf32>
      %49 = vector.shape_cast %48 : vector<1x10x1xf32> to vector<10x1xf32>
      %50 = vector.shape_cast %47 : vector<10x1xf32> to vector<1x10x1xf32>
      tpu.vector_store %arg4[%c0_21, %c0_22, %c0_23], %50 {strides = array<i32>} : memref<1x10x1xf32, #tpu.memory_space<vmem>>, vector<1x10x1xf32>,
      %c0_24 = arith.constant 0 : index
      %c0_25 = arith.constant 0 : index
      %51 = vector.load %arg7[%c0_24, %c0_25] : memref<10x128xf32, #tpu.memory_space<vmem>>, vector<10x128xf32>
      %cst_26 = arith.constant dense<0.000000e+00> : vector<10xf32>
      %52 = vector.multi_reduction <add>, %51, %cst_26 [1] : vector<10x128xf32> to vector<10xf32>
      %53 = vector.shape_cast %52 : vector<10xf32> to vector<10x1xf32>
      %c0_27 = arith.constant 0 : index
      %c0_28 = arith.constant 0 : index
      %c0_29 = arith.constant 0 : index
      %54 = vector.load %arg5[%c0_27, %c0_28, %c0_29] : memref<1x10x1xf32, #tpu.memory_space<vmem>>, vector<1x10x1xf32>
      %55 = vector.shape_cast %54 : vector<1x10x1xf32> to vector<10x1xf32>
      %56 = vector.shape_cast %53 : vector<10x1xf32> to vector<1x10x1xf32>
      tpu.vector_store %arg5[%c0_27, %c0_28, %c0_29], %56 {strides = array<i32>} : memref<1x10x1xf32, #tpu.memory_space<vmem>>, vector<1x10x1xf32>,
    } else {
    }
    return
  }
  func.func @transform_0(%arg0: i32, %arg1: i32) -> (i32, i32) {
    %c1_i32 = arith.constant 1 : i32
    %0 = arith.muli %arg0, %c1_i32 : i32
    %1 = arith.addi %0, %arg1 : i32
    %c1_i32_0 = arith.constant 1 : i32
    %2 = arith.minsi %1, %c1_i32_0 : i32
    %c0_i32 = arith.constant 0 : i32
    %c0_i32_1 = arith.constant 0 : i32
    return %2, %c0_i32 : i32, i32
  }
  func.func @transform_1(%arg0: i32, %arg1: i32) -> (i32, i32) {
    %c1_i32 = arith.constant 1 : i32
    %0 = arith.muli %arg0, %c1_i32 : i32
    %1 = arith.addi %0, %arg1 : i32
    %c1_i32_0 = arith.constant 1 : i32
    %2 = arith.minsi %1, %c1_i32_0 : i32
    %c0_i32 = arith.constant 0 : i32
    %c0_i32_1 = arith.constant 0 : i32
    return %c0_i32, %2 : i32, i32
  }
  func.func @transform_2(%arg0: i32, %arg1: i32) -> (i32, i32, i32) {
    %c0_i32 = arith.constant 0 : i32
    %c0_i32_0 = arith.constant 0 : i32
    %c0_i32_1 = arith.constant 0 : i32
    return %arg0, %c0_i32, %c0_i32_0 : i32, i32, i32
  }
  func.func @transform_3(%arg0: i32, %arg1: i32) -> (i32, i32, i32) {
    %c0_i32 = arith.constant 0 : i32
    %c0_i32_0 = arith.constant 0 : i32
    %c0_i32_1 = arith.constant 0 : i32
    return %arg0, %c0_i32, %c0_i32_0 : i32, i32, i32
  }
}

module attributes {stable_mosaic.version = 11 : i64} {
  func.func @_wce_partials_kernel(%arg0: i32, %arg1: i32, %arg2: memref<128x10xf32, #tpu.memory_space<vmem>>, %arg3: memref<1x128xi32, #tpu.memory_space<vmem>>, %arg4: memref<1x10x1xf32, #tpu.memory_space<vmem>>, %arg5: memref<1x10x1xf32, #tpu.memory_space<vmem>>, %arg6: memref<10x128xf32, #tpu.memory_space<vmem>>, %arg7: memref<10x128xf32, #tpu.memory_space<vmem>>) attributes {dimension_semantics = [#tpu.dimension_semantics<parallel>, #tpu.dimension_semantics<arbitrary>], iteration_bounds = array<i64: 2, 1>, scalar_prefetch = 0 : i64, scratch_operands = 2 : i64, tpu.core_type = #tpu.core_type<tc>, window_params = [{transform_indices = @transform_0, window_bounds = array<i64: 128, 10>}, {transform_indices = @transform_1, window_bounds = array<i64: 1, 128>}, {transform_indices = @transform_2, window_bounds = array<i64: 1, 10, 1>}, {transform_indices = @transform_3, window_bounds = array<i64: 1, 10, 1>}]} {
    %c0_i32 = arith.constant 0 : i32
    %0 = arith.cmpi eq, %arg1, %c0_i32 : i32
    %1 = arith.extui %0 : i1 to i32
    %c0_i32_0 = arith.constant 0 : i32
    %2 = arith.cmpi ne, %1, %c0_i32_0 : i32
    scf.if %2 {
      %cst_18 = arith.constant 0.000000e+00 : f32
      %45 = vector.broadcast %cst_18 : f32 to vector<10x128xf32>
      %c0_19 = arith.constant 0 : index
      %c0_20 = arith.constant 0 : index
      %46 = vector.load %arg6[%c0_19, %c0_20] : memref<10x128xf32, #tpu.memory_space<vmem>>, vector<10x128xf32>
      tpu.vector_store %arg6[%c0_19, %c0_20], %45 {strides = array<i32>} : memref<10x128xf32, #tpu.memory_space<vmem>>, vector<10x128xf32>,
      %cst_21 = arith.constant 0.000000e+00 : f32
      %47 = vector.broadcast %cst_21 : f32 to vector<10x128xf32>
      %c0_22 = arith.constant 0 : index
      %c0_23 = arith.constant 0 : index
      %48 = vector.load %arg7[%c0_22, %c0_23] : memref<10x128xf32, #tpu.memory_space<vmem>>, vector<10x128xf32>
      tpu.vector_store %arg7[%c0_22, %c0_23], %47 {strides = array<i32>} : memref<10x128xf32, #tpu.memory_space<vmem>>, vector<10x128xf32>,
    } else {
    }
    %c0 = arith.constant 0 : index
    %c0_1 = arith.constant 0 : index
    %3 = vector.load %arg2[%c0, %c0_1] : memref<128x10xf32, #tpu.memory_space<vmem>>, vector<128x10xf32>
    %4 = tpu.transpose %3, [1, 0] : vector<128x10xf32> -> vector<10x128xf32>
    %c0_2 = arith.constant 0 : index
    %c0_3 = arith.constant 0 : index
    %5 = vector.load %arg3[%c0_2, %c0_3] : memref<1x128xi32, #tpu.memory_space<vmem>>, vector<1x128xi32>
    %c1_i32 = arith.constant 1 : i32
    %6 = arith.muli %arg0, %c1_i32 : i32
    %7 = arith.addi %6, %arg1 : i32
    %c128_i32 = arith.constant 128 : i32
    %8 = arith.muli %7, %c128_i32 : i32
    %9 = tpu.iota {dimensions = array<i32: 1>} : vector<1x128xi32>
    %10 = vector.broadcast %8 : i32 to vector<1x128xi32>
    %11 = arith.addi %10, %9 : vector<1x128xi32>
    %c200_i32 = arith.constant 200 : i32
    %12 = vector.broadcast %c200_i32 : i32 to vector<1x128xi32>
    %13 = arith.cmpi slt, %11, %12 : vector<1x128xi32>
    %14 = tpu.iota {dimensions = array<i32: 0>} : vector<10x1xi32>
    %15 = vector.broadcast %5 : vector<1x128xi32> to vector<10x128xi32>
    %16 = vector.broadcast %14 : vector<10x1xi32> to vector<10x128xi32>
    %17 = arith.cmpi eq, %15, %16 : vector<10x128xi32>
    %18 = vector.broadcast %13 : vector<1x128xi1> to vector<10x128xi1>
    %19 = arith.andi %17, %18 : vector<10x128xi1>
    %cst = arith.constant dense<0xFF800000> : vector<128xf32>
    %20 = vector.multi_reduction <maximumf>, %4, %cst [0] : vector<10x128xf32> to vector<128xf32>
    %21 = vector.shape_cast %20 : vector<128xf32> to vector<1x128xf32>
    %22 = vector.broadcast %21 : vector<1x128xf32> to vector<10x128xf32>
    %23 = arith.subf %4, %22 : vector<10x128xf32>
    %24 = math.exp %23 : vector<10x128xf32>
    %cst_4 = arith.constant dense<0.000000e+00> : vector<128xf32>
    %25 = vector.multi_reduction <add>, %24, %cst_4 [0] : vector<10x128xf32> to vector<128xf32>
    %26 = vector.shape_cast %25 : vector<128xf32> to vector<1x128xf32>
    %27 = math.log %26 : vector<1x128xf32>
    %28 = arith.addf %27, %21 : vector<1x128xf32>
    %c0_5 = arith.constant 0 : index
    %c0_6 = arith.constant 0 : index
    %29 = vector.load %arg6[%c0_5, %c0_6] : memref<10x128xf32, #tpu.memory_space<vmem>>, vector<10x128xf32>
    %cst_7 = arith.constant 1.000000e+00 : f32
    %cst_8 = arith.constant 0.000000e+00 : f32
    %30 = vector.broadcast %cst_7 : f32 to vector<10x128xf32>
    %31 = vector.broadcast %cst_8 : f32 to vector<10x128xf32>
    %32 = arith.select %19, %30, %31 : vector<10x128xi1>, vector<10x128xf32>
    %33 = arith.addf %29, %32 : vector<10x128xf32>
    %c0_9 = arith.constant 0 : index
    %c0_10 = arith.constant 0 : index
    %34 = vector.load %arg6[%c0_9, %c0_10] : memref<10x128xf32, #tpu.memory_space<vmem>>, vector<10x128xf32>
    tpu.vector_store %arg6[%c0_9, %c0_10], %33 {strides = array<i32>} : memref<10x128xf32, #tpu.memory_space<vmem>>, vector<10x128xf32>,
    %c0_11 = arith.constant 0 : index
    %c0_12 = arith.constant 0 : index
    %35 = vector.load %arg7[%c0_11, %c0_12] : memref<10x128xf32, #tpu.memory_space<vmem>>, vector<10x128xf32>
    %36 = vector.broadcast %28 : vector<1x128xf32> to vector<10x128xf32>
    %37 = arith.subf %36, %4 : vector<10x128xf32>
    %cst_13 = arith.constant 0.000000e+00 : f32
    %38 = vector.broadcast %cst_13 : f32 to vector<10x128xf32>
    %39 = arith.select %19, %37, %38 : vector<10x128xi1>, vector<10x128xf32>
    %40 = arith.addf %35, %39 : vector<10x128xf32>
    %c0_14 = arith.constant 0 : index
    %c0_15 = arith.constant 0 : index
    %41 = vector.load %arg7[%c0_14, %c0_15] : memref<10x128xf32, #tpu.memory_space<vmem>>, vector<10x128xf32>
    tpu.vector_store %arg7[%c0_14, %c0_15], %40 {strides = array<i32>} : memref<10x128xf32, #tpu.memory_space<vmem>>, vector<10x128xf32>,
    %c0_i32_16 = arith.constant 0 : i32
    %42 = arith.cmpi eq, %arg1, %c0_i32_16 : i32
    %43 = arith.extui %42 : i1 to i32
    %c0_i32_17 = arith.constant 0 : i32
    %44 = arith.cmpi ne, %43, %c0_i32_17 : i32
    scf.if %44 {
      %c0_18 = arith.constant 0 : index
      %c0_19 = arith.constant 0 : index
      %45 = vector.load %arg6[%c0_18, %c0_19] : memref<10x128xf32, #tpu.memory_space<vmem>>, vector<10x128xf32>
      %cst_20 = arith.constant dense<0.000000e+00> : vector<10xf32>
      %46 = vector.multi_reduction <add>, %45, %cst_20 [1] : vector<10x128xf32> to vector<10xf32>
      %47 = vector.shape_cast %46 : vector<10xf32> to vector<10x1xf32>
      %c0_21 = arith.constant 0 : index
      %c0_22 = arith.constant 0 : index
      %c0_23 = arith.constant 0 : index
      %48 = vector.load %arg4[%c0_21, %c0_22, %c0_23] : memref<1x10x1xf32, #tpu.memory_space<vmem>>, vector<1x10x1xf32>
      %49 = vector.shape_cast %48 : vector<1x10x1xf32> to vector<10x1xf32>
      %50 = vector.shape_cast %47 : vector<10x1xf32> to vector<1x10x1xf32>
      tpu.vector_store %arg4[%c0_21, %c0_22, %c0_23], %50 {strides = array<i32>} : memref<1x10x1xf32, #tpu.memory_space<vmem>>, vector<1x10x1xf32>,
      %c0_24 = arith.constant 0 : index
      %c0_25 = arith.constant 0 : index
      %51 = vector.load %arg7[%c0_24, %c0_25] : memref<10x128xf32, #tpu.memory_space<vmem>>, vector<10x128xf32>
      %cst_26 = arith.constant dense<0.000000e+00> : vector<10xf32>
      %52 = vector.multi_reduction <add>, %51, %cst_26 [1] : vector<10x128xf32> to vector<10xf32>
      %53 = vector.shape_cast %52 : vector<10xf32> to vector<10x1xf32>
      %c0_27 = arith.constant 0 : index
      %c0_28 = arith.constant 0 : index
      %c0_29 = arith.constant 0 : index
      %54 = vector.load %arg5[%c0_27, %c0_28, %c0_29] : memref<1x10x1xf32, #tpu.memory_space<vmem>>, vector<1x10x1xf32>
      %55 = vector.shape_cast %54 : vector<1x10x1xf32> to vector<10x1xf32>
      %56 = vector.shape_cast %53 : vector<10x1xf32> to vector<1x10x1xf32>
      tpu.vector_store %arg5[%c0_27, %c0_28, %c0_29], %56 {strides = array<i32>} : memref<1x10x1xf32, #tpu.memory_space<vmem>>, vector<1x10x1xf32>,
    } else {
    }
    return
  }
  func.func @transform_0(%arg0: i32, %arg1: i32) -> (i32, i32) {
    %c1_i32 = arith.constant 1 : i32
    %0 = arith.muli %arg0, %c1_i32 : i32
    %1 = arith.addi %0, %arg1 : i32
    %c1_i32_0 = arith.constant 1 : i32
    %2 = arith.minsi %1, %c1_i32_0 : i32
    %c0_i32 = arith.constant 0 : i32
    %c0_i32_1 = arith.constant 0 : i32
    return %2, %c0_i32 : i32, i32
  }
  func.func @transform_1(%arg0: i32, %arg1: i32) -> (i32, i32) {
    %c1_i32 = arith.constant 1 : i32
    %0 = arith.muli %arg0, %c1_i32 : i32
    %1 = arith.addi %0, %arg1 : i32
    %c1_i32_0 = arith.constant 1 : i32
    %2 = arith.minsi %1, %c1_i32_0 : i32
    %c0_i32 = arith.constant 0 : i32
    %c0_i32_1 = arith.constant 0 : i32
    return %c0_i32, %2 : i32, i32
  }
  func.func @transform_2(%arg0: i32, %arg1: i32) -> (i32, i32, i32) {
    %c0_i32 = arith.constant 0 : i32
    %c0_i32_0 = arith.constant 0 : i32
    %c0_i32_1 = arith.constant 0 : i32
    return %arg0, %c0_i32, %c0_i32_0 : i32, i32, i32
  }
  func.func @transform_3(%arg0: i32, %arg1: i32) -> (i32, i32, i32) {
    %c0_i32 = arith.constant 0 : i32
    %c0_i32_0 = arith.constant 0 : i32
    %c0_i32_1 = arith.constant 0 : i32
    return %arg0, %c0_i32, %c0_i32_0 : i32, i32, i32
  }
}

module attributes {stable_mosaic.version = 11 : i64} {
  func.func @_wce_partials_kernel(%arg0: i32, %arg1: i32, %arg2: memref<10x128xf32, #tpu.memory_space<vmem>>, %arg3: memref<1x128xi32, #tpu.memory_space<vmem>>, %arg4: memref<1x10x1xf32, #tpu.memory_space<vmem>>, %arg5: memref<1x10x1xf32, #tpu.memory_space<vmem>>, %arg6: memref<10x128xf32, #tpu.memory_space<vmem>>, %arg7: memref<10x128xf32, #tpu.memory_space<vmem>>) attributes {dimension_semantics = [#tpu.dimension_semantics<parallel>, #tpu.dimension_semantics<arbitrary>], iteration_bounds = array<i64: 2, 1>, scalar_prefetch = 0 : i64, scratch_operands = 2 : i64, tpu.core_type = #tpu.core_type<tc>, window_params = [{transform_indices = @transform_0, window_bounds = array<i64: 10, 128>}, {transform_indices = @transform_1, window_bounds = array<i64: 1, 128>}, {transform_indices = @transform_2, window_bounds = array<i64: 1, 10, 1>}, {transform_indices = @transform_3, window_bounds = array<i64: 1, 10, 1>}]} {
    %c0_i32 = arith.constant 0 : i32
    %0 = arith.cmpi eq, %arg1, %c0_i32 : i32
    %1 = arith.extui %0 : i1 to i32
    %c0_i32_0 = arith.constant 0 : i32
    %2 = arith.cmpi ne, %1, %c0_i32_0 : i32
    scf.if %2 {
      %cst_18 = arith.constant 0.000000e+00 : f32
      %44 = vector.broadcast %cst_18 : f32 to vector<10x128xf32>
      %c0_19 = arith.constant 0 : index
      %c0_20 = arith.constant 0 : index
      %45 = vector.load %arg6[%c0_19, %c0_20] : memref<10x128xf32, #tpu.memory_space<vmem>>, vector<10x128xf32>
      tpu.vector_store %arg6[%c0_19, %c0_20], %44 {strides = array<i32>} : memref<10x128xf32, #tpu.memory_space<vmem>>, vector<10x128xf32>,
      %cst_21 = arith.constant 0.000000e+00 : f32
      %46 = vector.broadcast %cst_21 : f32 to vector<10x128xf32>
      %c0_22 = arith.constant 0 : index
      %c0_23 = arith.constant 0 : index
      %47 = vector.load %arg7[%c0_22, %c0_23] : memref<10x128xf32, #tpu.memory_space<vmem>>, vector<10x128xf32>
      tpu.vector_store %arg7[%c0_22, %c0_23], %46 {strides = array<i32>} : memref<10x128xf32, #tpu.memory_space<vmem>>, vector<10x128xf32>,
    } else {
    }
    %c0 = arith.constant 0 : index
    %c0_1 = arith.constant 0 : index
    %3 = vector.load %arg2[%c0, %c0_1] : memref<10x128xf32, #tpu.memory_space<vmem>>, vector<10x128xf32>
    %c0_2 = arith.constant 0 : index
    %c0_3 = arith.constant 0 : index
    %4 = vector.load %arg3[%c0_2, %c0_3] : memref<1x128xi32, #tpu.memory_space<vmem>>, vector<1x128xi32>
    %c1_i32 = arith.constant 1 : i32
    %5 = arith.muli %arg0, %c1_i32 : i32
    %6 = arith.addi %5, %arg1 : i32
    %c128_i32 = arith.constant 128 : i32
    %7 = arith.muli %6, %c128_i32 : i32
    %8 = tpu.iota {dimensions = array<i32: 1>} : vector<1x128xi32>
    %9 = vector.broadcast %7 : i32 to vector<1x128xi32>
    %10 = arith.addi %9, %8 : vector<1x128xi32>
    %c200_i32 = arith.constant 200 : i32
    %11 = vector.broadcast %c200_i32 : i32 to vector<1x128xi32>
    %12 = arith.cmpi slt, %10, %11 : vector<1x128xi32>
    %13 = tpu.iota {dimensions = array<i32: 0>} : vector<10x1xi32>
    %14 = vector.broadcast %4 : vector<1x128xi32> to vector<10x128xi32>
    %15 = vector.broadcast %13 : vector<10x1xi32> to vector<10x128xi32>
    %16 = arith.cmpi eq, %14, %15 : vector<10x128xi32>
    %17 = vector.broadcast %12 : vector<1x128xi1> to vector<10x128xi1>
    %18 = arith.andi %16, %17 : vector<10x128xi1>
    %cst = arith.constant dense<0xFF800000> : vector<128xf32>
    %19 = vector.multi_reduction <maximumf>, %3, %cst [0] : vector<10x128xf32> to vector<128xf32>
    %20 = vector.shape_cast %19 : vector<128xf32> to vector<1x128xf32>
    %21 = vector.broadcast %20 : vector<1x128xf32> to vector<10x128xf32>
    %22 = arith.subf %3, %21 : vector<10x128xf32>
    %23 = math.exp %22 : vector<10x128xf32>
    %cst_4 = arith.constant dense<0.000000e+00> : vector<128xf32>
    %24 = vector.multi_reduction <add>, %23, %cst_4 [0] : vector<10x128xf32> to vector<128xf32>
    %25 = vector.shape_cast %24 : vector<128xf32> to vector<1x128xf32>
    %26 = math.log %25 : vector<1x128xf32>
    %27 = arith.addf %26, %20 : vector<1x128xf32>
    %c0_5 = arith.constant 0 : index
    %c0_6 = arith.constant 0 : index
    %28 = vector.load %arg6[%c0_5, %c0_6] : memref<10x128xf32, #tpu.memory_space<vmem>>, vector<10x128xf32>
    %cst_7 = arith.constant 1.000000e+00 : f32
    %cst_8 = arith.constant 0.000000e+00 : f32
    %29 = vector.broadcast %cst_7 : f32 to vector<10x128xf32>
    %30 = vector.broadcast %cst_8 : f32 to vector<10x128xf32>
    %31 = arith.select %18, %29, %30 : vector<10x128xi1>, vector<10x128xf32>
    %32 = arith.addf %28, %31 : vector<10x128xf32>
    %c0_9 = arith.constant 0 : index
    %c0_10 = arith.constant 0 : index
    %33 = vector.load %arg6[%c0_9, %c0_10] : memref<10x128xf32, #tpu.memory_space<vmem>>, vector<10x128xf32>
    tpu.vector_store %arg6[%c0_9, %c0_10], %32 {strides = array<i32>} : memref<10x128xf32, #tpu.memory_space<vmem>>, vector<10x128xf32>,
    %c0_11 = arith.constant 0 : index
    %c0_12 = arith.constant 0 : index
    %34 = vector.load %arg7[%c0_11, %c0_12] : memref<10x128xf32, #tpu.memory_space<vmem>>, vector<10x128xf32>
    %35 = vector.broadcast %27 : vector<1x128xf32> to vector<10x128xf32>
    %36 = arith.subf %35, %3 : vector<10x128xf32>
    %cst_13 = arith.constant 0.000000e+00 : f32
    %37 = vector.broadcast %cst_13 : f32 to vector<10x128xf32>
    %38 = arith.select %18, %36, %37 : vector<10x128xi1>, vector<10x128xf32>
    %39 = arith.addf %34, %38 : vector<10x128xf32>
    %c0_14 = arith.constant 0 : index
    %c0_15 = arith.constant 0 : index
    %40 = vector.load %arg7[%c0_14, %c0_15] : memref<10x128xf32, #tpu.memory_space<vmem>>, vector<10x128xf32>
    tpu.vector_store %arg7[%c0_14, %c0_15], %39 {strides = array<i32>} : memref<10x128xf32, #tpu.memory_space<vmem>>, vector<10x128xf32>,
    %c0_i32_16 = arith.constant 0 : i32
    %41 = arith.cmpi eq, %arg1, %c0_i32_16 : i32
    %42 = arith.extui %41 : i1 to i32
    %c0_i32_17 = arith.constant 0 : i32
    %43 = arith.cmpi ne, %42, %c0_i32_17 : i32
    scf.if %43 {
      %c0_18 = arith.constant 0 : index
      %c0_19 = arith.constant 0 : index
      %44 = vector.load %arg6[%c0_18, %c0_19] : memref<10x128xf32, #tpu.memory_space<vmem>>, vector<10x128xf32>
      %cst_20 = arith.constant dense<0.000000e+00> : vector<10xf32>
      %45 = vector.multi_reduction <add>, %44, %cst_20 [1] : vector<10x128xf32> to vector<10xf32>
      %46 = vector.shape_cast %45 : vector<10xf32> to vector<10x1xf32>
      %c0_21 = arith.constant 0 : index
      %c0_22 = arith.constant 0 : index
      %c0_23 = arith.constant 0 : index
      %47 = vector.load %arg4[%c0_21, %c0_22, %c0_23] : memref<1x10x1xf32, #tpu.memory_space<vmem>>, vector<1x10x1xf32>
      %48 = vector.shape_cast %47 : vector<1x10x1xf32> to vector<10x1xf32>
      %49 = vector.shape_cast %46 : vector<10x1xf32> to vector<1x10x1xf32>
      tpu.vector_store %arg4[%c0_21, %c0_22, %c0_23], %49 {strides = array<i32>} : memref<1x10x1xf32, #tpu.memory_space<vmem>>, vector<1x10x1xf32>,
      %c0_24 = arith.constant 0 : index
      %c0_25 = arith.constant 0 : index
      %50 = vector.load %arg7[%c0_24, %c0_25] : memref<10x128xf32, #tpu.memory_space<vmem>>, vector<10x128xf32>
      %cst_26 = arith.constant dense<0.000000e+00> : vector<10xf32>
      %51 = vector.multi_reduction <add>, %50, %cst_26 [1] : vector<10x128xf32> to vector<10xf32>
      %52 = vector.shape_cast %51 : vector<10xf32> to vector<10x1xf32>
      %c0_27 = arith.constant 0 : index
      %c0_28 = arith.constant 0 : index
      %c0_29 = arith.constant 0 : index
      %53 = vector.load %arg5[%c0_27, %c0_28, %c0_29] : memref<1x10x1xf32, #tpu.memory_space<vmem>>, vector<1x10x1xf32>
      %54 = vector.shape_cast %53 : vector<1x10x1xf32> to vector<10x1xf32>
      %55 = vector.shape_cast %52 : vector<10x1xf32> to vector<1x10x1xf32>
      tpu.vector_store %arg5[%c0_27, %c0_28, %c0_29], %55 {strides = array<i32>} : memref<1x10x1xf32, #tpu.memory_space<vmem>>, vector<1x10x1xf32>,
    } else {
    }
    return
  }
  func.func @transform_0(%arg0: i32, %arg1: i32) -> (i32, i32) {
    %c1_i32 = arith.constant 1 : i32
    %0 = arith.muli %arg0, %c1_i32 : i32
    %1 = arith.addi %0, %arg1 : i32
    %c1_i32_0 = arith.constant 1 : i32
    %2 = arith.minsi %1, %c1_i32_0 : i32
    %c0_i32 = arith.constant 0 : i32
    %c0_i32_1 = arith.constant 0 : i32
    return %c0_i32, %2 : i32, i32
  }
  func.func @transform_1(%arg0: i32, %arg1: i32) -> (i32, i32) {
    %c1_i32 = arith.constant 1 : i32
    %0 = arith.muli %arg0, %c1_i32 : i32
    %1 = arith.addi %0, %arg1 : i32
    %c1_i32_0 = arith.constant 1 : i32
    %2 = arith.minsi %1, %c1_i32_0 : i32
    %c0_i32 = arith.constant 0 : i32
    %c0_i32_1 = arith.constant 0 : i32
    return %c0_i32, %2 : i32, i32
  }
  func.func @transform_2(%arg0: i32, %arg1: i32) -> (i32, i32, i32) {
    %c0_i32 = arith.constant 0 : i32
    %c0_i32_0 = arith.constant 0 : i32
    %c0_i32_1 = arith.constant 0 : i32
    return %arg0, %c0_i32, %c0_i32_0 : i32, i32, i32
  }
  func.func @transform_3(%arg0: i32, %arg1: i32) -> (i32, i32, i32) {
    %c0_i32 = arith.constant 0 : i32
    %c0_i32_0 = arith.constant 0 : i32
    %c0_i32_1 = arith.constant 0 : i32
    return %arg0, %c0_i32, %c0_i32_0 : i32, i32, i32
  }
}

module attributes {stable_mosaic.version = 11 : i64} {
  func.func @_wce_partials_kernel(%arg0: i32, %arg1: i32, %arg2: memref<10x128xf32, #tpu.memory_space<vmem>>, %arg3: memref<1x128xi32, #tpu.memory_space<vmem>>, %arg4: memref<1x10x1xf32, #tpu.memory_space<vmem>>, %arg5: memref<1x10x1xf32, #tpu.memory_space<vmem>>, %arg6: memref<10x128xf32, #tpu.memory_space<vmem>>, %arg7: memref<10x128xf32, #tpu.memory_space<vmem>>) attributes {dimension_semantics = [#tpu.dimension_semantics<parallel>, #tpu.dimension_semantics<arbitrary>], iteration_bounds = array<i64: 2, 2>, scalar_prefetch = 0 : i64, scratch_operands = 2 : i64, tpu.core_type = #tpu.core_type<tc>, window_params = [{transform_indices = @transform_0, window_bounds = array<i64: 10, 128>}, {transform_indices = @transform_1, window_bounds = array<i64: 1, 128>}, {transform_indices = @transform_2, window_bounds = array<i64: 1, 10, 1>}, {transform_indices = @transform_3, window_bounds = array<i64: 1, 10, 1>}]} {
    %c0_i32 = arith.constant 0 : i32
    %0 = arith.cmpi eq, %arg1, %c0_i32 : i32
    %1 = arith.extui %0 : i1 to i32
    %c0_i32_0 = arith.constant 0 : i32
    %2 = arith.cmpi ne, %1, %c0_i32_0 : i32
    scf.if %2 {
      %cst_17 = arith.constant 0.000000e+00 : f32
      %44 = vector.broadcast %cst_17 : f32 to vector<10x128xf32>
      %c0_18 = arith.constant 0 : index
      %c0_19 = arith.constant 0 : index
      %45 = vector.load %arg6[%c0_18, %c0_19] : memref<10x128xf32, #tpu.memory_space<vmem>>, vector<10x128xf32>
      tpu.vector_store %arg6[%c0_18, %c0_19], %44 {strides = array<i32>} : memref<10x128xf32, #tpu.memory_space<vmem>>, vector<10x128xf32>,
      %cst_20 = arith.constant 0.000000e+00 : f32
      %46 = vector.broadcast %cst_20 : f32 to vector<10x128xf32>
      %c0_21 = arith.constant 0 : index
      %c0_22 = arith.constant 0 : index
      %47 = vector.load %arg7[%c0_21, %c0_22] : memref<10x128xf32, #tpu.memory_space<vmem>>, vector<10x128xf32>
      tpu.vector_store %arg7[%c0_21, %c0_22], %46 {strides = array<i32>} : memref<10x128xf32, #tpu.memory_space<vmem>>, vector<10x128xf32>,
    } else {
    }
    %c0 = arith.constant 0 : index
    %c0_1 = arith.constant 0 : index
    %3 = vector.load %arg2[%c0, %c0_1] : memref<10x128xf32, #tpu.memory_space<vmem>>, vector<10x128xf32>
    %c0_2 = arith.constant 0 : index
    %c0_3 = arith.constant 0 : index
    %4 = vector.load %arg3[%c0_2, %c0_3] : memref<1x128xi32, #tpu.memory_space<vmem>>, vector<1x128xi32>
    %c2_i32 = arith.constant 2 : i32
    %5 = arith.muli %arg0, %c2_i32 : i32
    %6 = arith.addi %5, %arg1 : i32
    %c128_i32 = arith.constant 128 : i32
    %7 = arith.muli %6, %c128_i32 : i32
    %8 = tpu.iota {dimensions = array<i32: 1>} : vector<1x128xi32>
    %9 = vector.broadcast %7 : i32 to vector<1x128xi32>
    %10 = arith.addi %9, %8 : vector<1x128xi32>
    %c300_i32 = arith.constant 300 : i32
    %11 = vector.broadcast %c300_i32 : i32 to vector<1x128xi32>
    %12 = arith.cmpi slt, %10, %11 : vector<1x128xi32>
    %13 = tpu.iota {dimensions = array<i32: 0>} : vector<10x1xi32>
    %14 = vector.broadcast %4 : vector<1x128xi32> to vector<10x128xi32>
    %15 = vector.broadcast %13 : vector<10x1xi32> to vector<10x128xi32>
    %16 = arith.cmpi eq, %14, %15 : vector<10x128xi32>
    %17 = vector.broadcast %12 : vector<1x128xi1> to vector<10x128xi1>
    %18 = arith.andi %16, %17 : vector<10x128xi1>
    %cst = arith.constant dense<0xFF800000> : vector<128xf32>
    %19 = vector.multi_reduction <maximumf>, %3, %cst [0] : vector<10x128xf32> to vector<128xf32>
    %20 = vector.shape_cast %19 : vector<128xf32> to vector<1x128xf32>
    %21 = vector.broadcast %20 : vector<1x128xf32> to vector<10x128xf32>
    %22 = arith.subf %3, %21 : vector<10x128xf32>
    %23 = math.exp %22 : vector<10x128xf32>
    %cst_4 = arith.constant dense<0.000000e+00> : vector<128xf32>
    %24 = vector.multi_reduction <add>, %23, %cst_4 [0] : vector<10x128xf32> to vector<128xf32>
    %25 = vector.shape_cast %24 : vector<128xf32> to vector<1x128xf32>
    %26 = math.log %25 : vector<1x128xf32>
    %27 = arith.addf %26, %20 : vector<1x128xf32>
    %c0_5 = arith.constant 0 : index
    %c0_6 = arith.constant 0 : index
    %28 = vector.load %arg6[%c0_5, %c0_6] : memref<10x128xf32, #tpu.memory_space<vmem>>, vector<10x128xf32>
    %cst_7 = arith.constant 1.000000e+00 : f32
    %cst_8 = arith.constant 0.000000e+00 : f32
    %29 = vector.broadcast %cst_7 : f32 to vector<10x128xf32>
    %30 = vector.broadcast %cst_8 : f32 to vector<10x128xf32>
    %31 = arith.select %18, %29, %30 : vector<10x128xi1>, vector<10x128xf32>
    %32 = arith.addf %28, %31 : vector<10x128xf32>
    %c0_9 = arith.constant 0 : index
    %c0_10 = arith.constant 0 : index
    %33 = vector.load %arg6[%c0_9, %c0_10] : memref<10x128xf32, #tpu.memory_space<vmem>>, vector<10x128xf32>
    tpu.vector_store %arg6[%c0_9, %c0_10], %32 {strides = array<i32>} : memref<10x128xf32, #tpu.memory_space<vmem>>, vector<10x128xf32>,
    %c0_11 = arith.constant 0 : index
    %c0_12 = arith.constant 0 : index
    %34 = vector.load %arg7[%c0_11, %c0_12] : memref<10x128xf32, #tpu.memory_space<vmem>>, vector<10x128xf32>
    %35 = vector.broadcast %27 : vector<1x128xf32> to vector<10x128xf32>
    %36 = arith.subf %35, %3 : vector<10x128xf32>
    %cst_13 = arith.constant 0.000000e+00 : f32
    %37 = vector.broadcast %cst_13 : f32 to vector<10x128xf32>
    %38 = arith.select %18, %36, %37 : vector<10x128xi1>, vector<10x128xf32>
    %39 = arith.addf %34, %38 : vector<10x128xf32>
    %c0_14 = arith.constant 0 : index
    %c0_15 = arith.constant 0 : index
    %40 = vector.load %arg7[%c0_14, %c0_15] : memref<10x128xf32, #tpu.memory_space<vmem>>, vector<10x128xf32>
    tpu.vector_store %arg7[%c0_14, %c0_15], %39 {strides = array<i32>} : memref<10x128xf32, #tpu.memory_space<vmem>>, vector<10x128xf32>,
    %c1_i32 = arith.constant 1 : i32
    %41 = arith.cmpi eq, %arg1, %c1_i32 : i32
    %42 = arith.extui %41 : i1 to i32
    %c0_i32_16 = arith.constant 0 : i32
    %43 = arith.cmpi ne, %42, %c0_i32_16 : i32
    scf.if %43 {
      %c0_17 = arith.constant 0 : index
      %c0_18 = arith.constant 0 : index
      %44 = vector.load %arg6[%c0_17, %c0_18] : memref<10x128xf32, #tpu.memory_space<vmem>>, vector<10x128xf32>
      %cst_19 = arith.constant dense<0.000000e+00> : vector<10xf32>
      %45 = vector.multi_reduction <add>, %44, %cst_19 [1] : vector<10x128xf32> to vector<10xf32>
      %46 = vector.shape_cast %45 : vector<10xf32> to vector<10x1xf32>
      %c0_20 = arith.constant 0 : index
      %c0_21 = arith.constant 0 : index
      %c0_22 = arith.constant 0 : index
      %47 = vector.load %arg4[%c0_20, %c0_21, %c0_22] : memref<1x10x1xf32, #tpu.memory_space<vmem>>, vector<1x10x1xf32>
      %48 = vector.shape_cast %47 : vector<1x10x1xf32> to vector<10x1xf32>
      %49 = vector.shape_cast %46 : vector<10x1xf32> to vector<1x10x1xf32>
      tpu.vector_store %arg4[%c0_20, %c0_21, %c0_22], %49 {strides = array<i32>} : memref<1x10x1xf32, #tpu.memory_space<vmem>>, vector<1x10x1xf32>,
      %c0_23 = arith.constant 0 : index
      %c0_24 = arith.constant 0 : index
      %50 = vector.load %arg7[%c0_23, %c0_24] : memref<10x128xf32, #tpu.memory_space<vmem>>, vector<10x128xf32>
      %cst_25 = arith.constant dense<0.000000e+00> : vector<10xf32>
      %51 = vector.multi_reduction <add>, %50, %cst_25 [1] : vector<10x128xf32> to vector<10xf32>
      %52 = vector.shape_cast %51 : vector<10xf32> to vector<10x1xf32>
      %c0_26 = arith.constant 0 : index
      %c0_27 = arith.constant 0 : index
      %c0_28 = arith.constant 0 : index
      %53 = vector.load %arg5[%c0_26, %c0_27, %c0_28] : memref<1x10x1xf32, #tpu.memory_space<vmem>>, vector<1x10x1xf32>
      %54 = vector.shape_cast %53 : vector<1x10x1xf32> to vector<10x1xf32>
      %55 = vector.shape_cast %52 : vector<10x1xf32> to vector<1x10x1xf32>
      tpu.vector_store %arg5[%c0_26, %c0_27, %c0_28], %55 {strides = array<i32>} : memref<1x10x1xf32, #tpu.memory_space<vmem>>, vector<1x10x1xf32>,
    } else {
    }
    return
  }
  func.func @transform_0(%arg0: i32, %arg1: i32) -> (i32, i32) {
    %c2_i32 = arith.constant 2 : i32
    %0 = arith.muli %arg0, %c2_i32 : i32
    %1 = arith.addi %0, %arg1 : i32
    %c2_i32_0 = arith.constant 2 : i32
    %2 = arith.minsi %1, %c2_i32_0 : i32
    %c0_i32 = arith.constant 0 : i32
    %c0_i32_1 = arith.constant 0 : i32
    return %c0_i32, %2 : i32, i32
  }
  func.func @transform_1(%arg0: i32, %arg1: i32) -> (i32, i32) {
    %c2_i32 = arith.constant 2 : i32
    %0 = arith.muli %arg0, %c2_i32 : i32
    %1 = arith.addi %0, %arg1 : i32
    %c2_i32_0 = arith.constant 2 : i32
    %2 = arith.minsi %1, %c2_i32_0 : i32
    %c0_i32 = arith.constant 0 : i32
    %c0_i32_1 = arith.constant 0 : i32
    return %c0_i32, %2 : i32, i32
  }
  func.func @transform_2(%arg0: i32, %arg1: i32) -> (i32, i32, i32) {
    %c0_i32 = arith.constant 0 : i32
    %c0_i32_0 = arith.constant 0 : i32
    %c0_i32_1 = arith.constant 0 : i32
    return %arg0, %c0_i32, %c0_i32_0 : i32, i32, i32
  }
  func.func @transform_3(%arg0: i32, %arg1: i32) -> (i32, i32, i32) {
    %c0_i32 = arith.constant 0 : i32
    %c0_i32_0 = arith.constant 0 : i32
    %c0_i32_1 = arith.constant 0 : i32
    return %arg0, %c0_i32, %c0_i32_0 : i32, i32, i32
  }
}

</mosaic_0001>

<bundles_post_ra>
// kernel: tpu_custom_call.1
= control target key start
LH: loop header
LB: loop body
LE: loop exit
PB: predicated region body
PF: predicated region fallthrough
CT: control target
= control target key end

     0   :  { %s619_s12 = smov 0   ;;  %s621_s13 = smov 0   ;;  %s708_s0 = inlined_call_operand.vmem [shape: f32[200,10], index: 0, kind: input, shape index: {}]   ;;  %s709_s1 = inlined_call_operand.vmem [shape: s32[1,200], index: 1, kind: input, shape index: {}]   ;;  %s710_s2 = inlined_call_operand.vmem [shape: f32[2,10,1], index: 2, kind: output, shape index: {0}]   ;;  %s711_s3 = inlined_call_operand.vmem [shape: f32[2,10,1], index: 3, kind: output, shape index: {1}]  }
   0x1   :  { %s623_s14 = smov 0  }
   0x2 LB: > { %s26_s15 = sadd.s32 1, %s592_s13  ;;  %p527_p0 = scmp.ge.s32.totalorder %s596_s14, 1  ;;  %s596_s14 = sphi %s623_s14, %s14_s14   ;;  %s592_s13 = sphi %s621_s13, %s717_s13   ;;  %s588_s12 = sphi %s619_s12, %s716_s12  }
   0x3   : > { %p28_p1 = scmp.ge.s32.totalorder %s26_s15, 2  ;;  %p193_p2 = scmp.lt.s32.totalorder %s596_s14, 3 }
   0x5   : > { %s719_s15 = smov (%p28_p1, %s26_s15), 0  ;;  %p194_p3 = pnand %p527_p0, %p193_p2 }
   0x6   : > { %p236_p4 = scmp.lt.s32.totalorder (!%p194_p3), %s588_s12, 1  ;;  %v333_v1 = vlaneseq (!%p194_p3)  ;;  %v598_v3 = vmov (!%p194_p3), 0.0   ;;  %s537_s23 = sshll.u32 (!%p194_p3), %s588_s12, 7  ;;  %vm351_vm5 = vcmask (!%p194_p3), 1041408   ;;  %vm405_vm6 = vcmask (!%p194_p3), 7168  }
   0x7   : > { %197 = sbr.rel (%p194_p3) target bundleno = 375 (0x177), region = 28  ;;  %279 = vst [vmem:[#allocation2 + $0x8] sm:$0x3] (!%p194_p3), %v598_v3  ;;  %281 = vst [vmem:[#allocation3 + $0x8] sm:$0x3] (!%p194_p3), %v598_v3  ;;  %v335_v5 = vstv (!%p194_p3), %s537_s23  ;;  %vm407_vm7 = vcmask (!%p194_p3), 1024  }
   0x8   : > { %v334_v4 = vand.u32 (!%p194_p3), 127, %v333_v1  ;;  %v339_v6 = vshrl.u32 (!%p194_p3), %v333_v1, 7 }
   0xa   : > { %v336_v8 = vadd.s32 (!%p194_p3), %v335_v5, %v334_v4  ;;  %v340_v9 = vadd.s32 (!%p194_p3), 8, %v339_v6 }
   0xc   : > { %vm337_vm1 = vcmp.lt.s32.totalorder (!%p194_p3), %v336_v8, 200 }
   0xe   : > { %s237_s16 = scalar_select %p236_p4, %s588_s12, 1  ;;  %v378_v13 = vld [vmem:[#allocation2 + $0x8] sm:$0x3]  ;;  %v386_v60 = vld [vmem:[#allocation3 + $0x8] sm:$0x3] }
  0x10   : > { %s637_s17 = sshll.u32 %s237_s16, 4  ;;  %s721_s16 = smov (!%p236_p4, %s237_s16), 1 }
  0x11   : > { %p243_p5 = scmp.lt.s32.totalorder %s637_s17, 24  ;;  %s260_s26 = scalar_lea.vmem %s709_s1, %s721_s16 }
  0x12   : > { %v538_v7 = vld [vmem:[%s260_s26] ss:$0 sm:$0xff]  ;;  %s683_s29 = scalar_lea.vmem %s710_s2, %s637_s17  ;;  %s273_s5 = scalar_lea.vmem %s711_s3, %s637_s17 }
  0x13   : > { %s244_s18 = scalar_select %p243_p5, %s637_s17, 24  ;;  %vm345_vm0 = vcmp.eq.s32.totalorder %v538_v7, %v339_v6  ;;  %vm346_vm2 = vcmp.eq.s32.totalorder %v538_v7, %v340_v9 }
  0x14   : > { %vm652_vm3 = vmand %vm345_vm0, %vm337_vm1 }
  0x15   : > { %s529_s19 = sshll.u32 %s244_s18, 3  ;;  %vm656_vm4 = vmand %vm346_vm2, %vm337_vm1  ;;  %v379_v14 = vsel %vm652_vm3, 1.0, %v598_v3 }
  0x16   : > { %s644_s22 = scalar_lea.vmem %s708_s0, %s529_s19  ;;  %v380_v16 = vsel %vm656_vm4, 1.0, %v598_v3  ;;  %400 = vadd.xlane.f32.xlu1 %v379_v14 }
  0x17   : > { %v282_v0 = vld [vmem:[%s644_s22] sm:$0xff]  ;;  %v283_v2 = vld [vmem:[%s644_s22 + $0x8] sm:$0xff]  ;;  %v284_v10 = vld [vmem:[%s644_s22 + $0x10] sm:$0xff]  ;;  %v382_v17 = vadd.f32 %v380_v16, %v378_v13 }
  0x18   : > { %298 = vxpose.xlu0.b32.start [1/16] (narrow) %v282_v0, 16  ;;  %v285_v15 = vld [vmem:[%s644_s22 + $0x18] sm:$0xff]  ;;  %v286_v18 = vld [vmem:[%s644_s22 + $0x20] sm:$0xff]  ;;  %v287_v19 = vld [vmem:[%s644_s22 + $0x28] sm:$0xff] }
  0x19   : > { %384 = vst [vmem:[#allocation2 + $0x8] sm:$0x3] %v382_v17  ;;  %v288_v20 = vld [vmem:[%s644_s22 + $0x30] sm:$0xff]  ;;  %v289_v21 = vld [vmem:[%s644_s22 + $0x38] sm:$0xff]  ;;  %v290_v22 = vld [vmem:[%s644_s22 + $0x40] sm:$0xff] }
  0x1a   : > { %v291_v23 = vld [vmem:[%s644_s22 + $0x48] sm:$0xff]  ;;  %v292_v24 = vld [vmem:[%s644_s22 + $0x50] sm:$0xff]  ;;  %v293_v25 = vld [vmem:[%s644_s22 + $0x58] sm:$0xff] }
  0x1b   : > { %v294_v26 = vld [vmem:[%s644_s22 + $0x60] sm:$0xff]  ;;  %v295_v27 = vld [vmem:[%s644_s22 + $0x68] sm:$0xff]  ;;  %v296_v28 = vld [vmem:[%s644_s22 + $0x70] sm:$0xff] }
  0x1c   : > { %299 = vxpose.xlu0.b32.cont [2/16] (narrow) %v283_v2, 16  ;;  %v297_v29 = vld [vmem:[%s644_s22 + $0x78] sm:$0xff] }
  0x20   : > { %300 = vxpose.xlu0.b32.cont [3/16] (narrow) %v284_v10, 16  ;;  %v399_v30 = vld [vmem:[#allocation2 + $0x8] sm:$0x3] }
  0x21   : > { %v402_v31 = vsel %vm351_vm5, %v399_v30, 0.0 }
  0x22   : > { %403 = vadd.xlane.f32.xlu1 %v402_v31 }
  0x24   : > { %301 = vxpose.xlu0.b32.cont [4/16] (narrow) %v285_v15, 16 }
  0x28   : > { %302 = vxpose.xlu0.b32.cont [5/16] (narrow) %v286_v18, 16 }
  0x2c   : > { %303 = vxpose.xlu0.b32.cont [6/16] (narrow) %v287_v19, 16 }
  0x30   : > { %304 = vxpose.xlu0.b32.cont [7/16] (narrow) %v288_v20, 16 }
  0x34   : > { %305 = vxpose.xlu0.b32.cont [8/16] (narrow) %v289_v21, 16 }
  0x38   : > { %306 = vxpose.xlu0.b32.cont [9/16] (narrow) %v290_v22, 16 }
  0x3c   : > { %307 = vxpose.xlu0.b32.cont [10/16] (narrow) %v291_v23, 16 }
  0x40   : > { %308 = vxpose.xlu0.b32.cont [11/16] (narrow) %v292_v24, 16 }
  0x44   : > { %309 = vxpose.xlu0.b32.cont [12/16] (narrow) %v293_v25, 16 }
  0x48   : > { %310 = vxpose.xlu0.b32.cont [13/16] (narrow) %v294_v26, 16 }
  0x4c   : > { %311 = vxpose.xlu0.b32.cont [14/16] (narrow) %v295_v27, 16 }
  0x50   : > { %312 = vxpose.xlu0.b32.cont [15/16] (narrow) %v296_v28, 16 }
  0x54   : > { %313 = vxpose.xlu0.b32.end [16/16] (narrow) %v297_v29, 16 }
  0x98   : > { %v314_v32 = vpop.trf.xlu0 }
  0x9c   : > { %v315_v33 = vpop.trf.xlu0 }
  0x9d   : > { %v352_v34 = vsel %vm351_vm5, %v315_v33, -inf }
  0x9e   : > { %v353_v35 = vmax.f32 %v314_v32, %v352_v34 }
  0xa0   : > { %v354_v36 = vrot.slane %v353_v35, 4 }
  0xa2   : > { %v355_v37 = vmax.f32 %v353_v35, %v354_v36 }
  0xa3   : > { %v401_v46 = vpop.xlane.xlu1 %400 }
  0xa4   : > { %v356_v38 = vrot.slane %v355_v37, 2  ;;  %406 = vst.msk [vmem:[%s683_s29] sm:$0xff] %vm405_vm6, %v401_v46 }
  0xa6   : > { %v357_v39 = vmax.f32 %v355_v37, %v356_v38 }
  0xa8   : > { %v358_v40 = vrot.slane %v357_v39, 1 }
  0xaa   : > { %v359_v41 = vmax.f32 %v357_v39, %v358_v40 }
  0xac   : > { %v360_v42 = vsub.f32 %v314_v32, %v359_v41  ;;  %v361_v43 = vsub.f32 %v315_v33, %v359_v41 }
  0xae   : > { %v362_v44 = vmul.f32 1.442695, %v360_v42  ;;  %v364_v45 = vmul.f32 1.442695, %v361_v43 }
  0xaf   : > { %v404_v4 = vpop.xlane.xlu1 %403 }
  0xb0   : > { %568 = vpow2.f32 %v362_v44  ;;  %408 = vst.msk [vmem:[%s683_s29 + $0x8] sm:$0x3] %vm407_vm7, %v404_v4 }
  0xb1   : > { %570 = vpow2.f32 %v364_v45 }
  0xba   : > { %v569_v47 = vpop.eup %568 }
  0xbb   : > { %v571_v48 = vpop.eup %570 }
  0xbc   : > { %v366_v49 = vsel %vm351_vm5, %v571_v48, 0.0 }
  0xbd   : > { %v367_v50 = vadd.f32 %v569_v47, %v366_v49 }
  0xbf   : > { %v368_v51 = vrot.slane %v367_v50, 4 }
  0xc1   : > { %v369_v52 = vadd.f32 %v368_v51, %v367_v50 }
  0xc3   : > { %v370_v53 = vrot.slane %v369_v52, 2 }
  0xc5   : > { %v371_v54 = vadd.f32 %v370_v53, %v369_v52 }
  0xc7   : > { %v372_v55 = vrot.slane %v371_v54, 1 }
  0xc9   : > { %v373_v56 = vadd.f32 %v372_v55, %v371_v54 }
  0xcb   : > { %572 = vlog2.f32 %v373_v56 }
  0xd5   : > { %v573_v57 = vpop.eup %572 }
  0xd6   : > { %v375_v58 = vmul.f32 0.6931472, %v573_v57 }
  0xd8   : > { %v376_v59 = vadd.f32 %v375_v58, %v359_v41 }
  0xda   : > { %v387_v61 = vsub.f32 %v376_v59, %v314_v32  ;;  %v388_v62 = vsub.f32 %v376_v59, %v315_v33 }
  0xdc   : > { %v389_v63 = vsel %vm652_vm3, %v387_v61, 0.0  ;;  %v390_v0 = vsel %vm656_vm4, %v388_v62, 0.0 }
  0xdd   : > { %v392_v1 = vadd.f32 %v390_v0, %v386_v60  ;;  %411 = vadd.xlane.f32.xlu1 %v389_v63 }
  0xdf   : > { %394 = vst [vmem:[#allocation3 + $0x8] sm:$0x3] %v392_v1 }
  0xe6   : > { %v410_v2 = vld [vmem:[#allocation3 + $0x8] sm:$0x3] }
  0xe7   : > { %v413_v3 = vsel %vm351_vm5, %v410_v2, 0.0 }
  0xe8   : > { %414 = vadd.xlane.f32.xlu1 %v413_v3 }
 0x16a   : > { %v412_v5 = vpop.xlane.xlu1 %411 }
 0x16b   : > { %416 = vst.msk [vmem:[%s273_s5] sm:$0xff] %vm405_vm6, %v412_v5 }
 0x175   : > { %v415_v6 = vpop.xlane.xlu1 %414 }
 0x176   : > { %417 = vst.msk [vmem:[%s273_s5 + $0x8] sm:$0x3] %vm407_vm7, %v415_v6 }
 0x177 PF: > { %s14_s14 = sadd.s32 1, %s596_s14   ;;  %s716_s12 = smov %s592_s13 }
 0x178   : > { %p11_p6 = scmp.ge.s32.totalorder %s14_s14, 4   ;;  %s717_s13 = smov %s719_s15 }
 0x17a   :  { %13 = sbr.rel (!%p11_p6) target bundleno = 2 (0x2), region = 81 }

// kernel: tpu_custom_call.1
= control target key start
LH: loop header
LB: loop body
LE: loop exit
PB: predicated region body
PF: predicated region fallthrough
CT: control target
= control target key end

     0   :  { %s619_s12 = smov 0   ;;  %s621_s13 = smov 0   ;;  %s708_s0 = inlined_call_operand.vmem [shape: f32[200,10], index: 0, kind: input, shape index: {}]   ;;  %s709_s1 = inlined_call_operand.vmem [shape: s32[1,200], index: 1, kind: input, shape index: {}]   ;;  %s710_s2 = inlined_call_operand.vmem [shape: f32[2,10,1], index: 2, kind: output, shape index: {0}]   ;;  %s711_s3 = inlined_call_operand.vmem [shape: f32[2,10,1], index: 3, kind: output, shape index: {1}]  }
   0x1   :  { %s623_s14 = smov 0  }
   0x2 LB: > { %s26_s15 = sadd.s32 1, %s592_s13  ;;  %p527_p0 = scmp.ge.s32.totalorder %s596_s14, 1  ;;  %s596_s14 = sphi %s623_s14, %s14_s14   ;;  %s592_s13 = sphi %s621_s13, %s717_s13   ;;  %s588_s12 = sphi %s619_s12, %s716_s12  }
   0x3   : > { %p28_p1 = scmp.ge.s32.totalorder %s26_s15, 2  ;;  %p193_p2 = scmp.lt.s32.totalorder %s596_s14, 3 }
   0x5   : > { %s719_s15 = smov (%p28_p1, %s26_s15), 0  ;;  %p194_p3 = pnand %p527_p0, %p193_p2 }
   0x6   : > { %p236_p4 = scmp.lt.s32.totalorder (!%p194_p3), %s588_s12, 1  ;;  %v333_v1 = vlaneseq (!%p194_p3)  ;;  %v598_v3 = vmov (!%p194_p3), 0.0   ;;  %s537_s23 = sshll.u32 (!%p194_p3), %s588_s12, 7  ;;  %vm351_vm5 = vcmask (!%p194_p3), 1041408   ;;  %vm405_vm6 = vcmask (!%p194_p3), 7168  }
   0x7   : > { %197 = sbr.rel (%p194_p3) target bundleno = 375 (0x177), region = 28  ;;  %279 = vst [vmem:[#allocation2 + $0x8] sm:$0x3] (!%p194_p3), %v598_v3  ;;  %281 = vst [vmem:[#allocation3 + $0x8] sm:$0x3] (!%p194_p3), %v598_v3  ;;  %v335_v5 = vstv (!%p194_p3), %s537_s23  ;;  %vm407_vm7 = vcmask (!%p194_p3), 1024  }
   0x8   : > { %v334_v4 = vand.u32 (!%p194_p3), 127, %v333_v1  ;;  %v339_v6 = vshrl.u32 (!%p194_p3), %v333_v1, 7 }
   0xa   : > { %v336_v8 = vadd.s32 (!%p194_p3), %v335_v5, %v334_v4  ;;  %v340_v9 = vadd.s32 (!%p194_p3), 8, %v339_v6 }
   0xc   : > { %vm337_vm1 = vcmp.lt.s32.totalorder (!%p194_p3), %v336_v8, 200 }
   0xe   : > { %s237_s16 = scalar_select %p236_p4, %s588_s12, 1  ;;  %v378_v13 = vld [vmem:[#allocation2 + $0x8] sm:$0x3]  ;;  %v386_v60 = vld [vmem:[#allocation3 + $0x8] sm:$0x3] }
  0x10   : > { %s637_s17 = sshll.u32 %s237_s16, 4  ;;  %s721_s16 = smov (!%p236_p4, %s237_s16), 1 }
  0x11   : > { %p243_p5 = scmp.lt.s32.totalorder %s637_s17, 24  ;;  %s260_s26 = scalar_lea.vmem %s709_s1, %s721_s16 }
  0x12   : > { %v538_v7 = vld [vmem:[%s260_s26] ss:$0 sm:$0xff]  ;;  %s683_s29 = scalar_lea.vmem %s710_s2, %s637_s17  ;;  %s273_s5 = scalar_lea.vmem %s711_s3, %s637_s17 }
  0x13   : > { %s244_s18 = scalar_select %p243_p5, %s637_s17, 24  ;;  %vm345_vm0 = vcmp.eq.s32.totalorder %v538_v7, %v339_v6  ;;  %vm346_vm2 = vcmp.eq.s32.totalorder %v538_v7, %v340_v9 }
  0x14   : > { %vm652_vm3 = vmand %vm345_vm0, %vm337_vm1 }
  0x15   : > { %s529_s19 = sshll.u32 %s244_s18, 3  ;;  %vm656_vm4 = vmand %vm346_vm2, %vm337_vm1  ;;  %v379_v14 = vsel %vm652_vm3, 1.0, %v598_v3 }
  0x16   : > { %s644_s22 = scalar_lea.vmem %s708_s0, %s529_s19  ;;  %v380_v16 = vsel %vm656_vm4, 1.0, %v598_v3  ;;  %400 = vadd.xlane.f32.xlu1 %v379_v14 }
  0x17   : > { %v282_v0 = vld [vmem:[%s644_s22] sm:$0xff]  ;;  %v283_v2 = vld [vmem:[%s644_s22 + $0x8] sm:$0xff]  ;;  %v284_v10 = vld [vmem:[%s644_s22 + $0x10] sm:$0xff]  ;;  %v382_v17 = vadd.f32 %v380_v16, %v378_v13 }
  0x18   : > { %298 = vxpose.xlu0.b32.start [1/16] (narrow) %v282_v0, 16  ;;  %v285_v15 = vld [vmem:[%s644_s22 + $0x18] sm:$0xff]  ;;  %v286_v18 = vld [vmem:[%s644_s22 + $0x20] sm:$0xff]  ;;  %v287_v19 = vld [vmem:[%s644_s22 + $0x28] sm:$0xff] }
  0x19   : > { %384 = vst [vmem:[#allocation2 + $0x8] sm:$0x3] %v382_v17  ;;  %v288_v20 = vld [vmem:[%s644_s22 + $0x30] sm:$0xff]  ;;  %v289_v21 = vld [vmem:[%s644_s22 + $0x38] sm:$0xff]  ;;  %v290_v22 = vld [vmem:[%s644_s22 + $0x40] sm:$0xff] }
  0x1a   : > { %v291_v23 = vld [vmem:[%s644_s22 + $0x48] sm:$0xff]  ;;  %v292_v24 = vld [vmem:[%s644_s22 + $0x50] sm:$0xff]  ;;  %v293_v25 = vld [vmem:[%s644_s22 + $0x58] sm:$0xff] }
  0x1b   : > { %v294_v26 = vld [vmem:[%s644_s22 + $0x60] sm:$0xff]  ;;  %v295_v27 = vld [vmem:[%s644_s22 + $0x68] sm:$0xff]  ;;  %v296_v28 = vld [vmem:[%s644_s22 + $0x70] sm:$0xff] }
  0x1c   : > { %299 = vxpose.xlu0.b32.cont [2/16] (narrow) %v283_v2, 16  ;;  %v297_v29 = vld [vmem:[%s644_s22 + $0x78] sm:$0xff] }
  0x20   : > { %300 = vxpose.xlu0.b32.cont [3/16] (narrow) %v284_v10, 16  ;;  %v399_v30 = vld [vmem:[#allocation2 + $0x8] sm:$0x3] }
  0x21   : > { %v402_v31 = vsel %vm351_vm5, %v399_v30, 0.0 }
  0x22   : > { %403 = vadd.xlane.f32.xlu1 %v402_v31 }
  0x24   : > { %301 = vxpose.xlu0.b32.cont [4/16] (narrow) %v285_v15, 16 }
  0x28   : > { %302 = vxpose.xlu0.b32.cont [5/16] (narrow) %v286_v18, 16 }
  0x2c   : > { %303 = vxpose.xlu0.b32.cont [6/16] (narrow) %v287_v19, 16 }
  0x30   : > { %304 = vxpose.xlu0.b32.cont [7/16] (narrow) %v288_v20, 16 }
  0x34   : > { %305 = vxpose.xlu0.b32.cont [8/16] (narrow) %v289_v21, 16 }
  0x38   : > { %306 = vxpose.xlu0.b32.cont [9/16] (narrow) %v290_v22, 16 }
  0x3c   : > { %307 = vxpose.xlu0.b32.cont [10/16] (narrow) %v291_v23, 16 }
  0x40   : > { %308 = vxpose.xlu0.b32.cont [11/16] (narrow) %v292_v24, 16 }
  0x44   : > { %309 = vxpose.xlu0.b32.cont [12/16] (narrow) %v293_v25, 16 }
  0x48   : > { %310 = vxpose.xlu0.b32.cont [13/16] (narrow) %v294_v26, 16 }
  0x4c   : > { %311 = vxpose.xlu0.b32.cont [14/16] (narrow) %v295_v27, 16 }
  0x50   : > { %312 = vxpose.xlu0.b32.cont [15/16] (narrow) %v296_v28, 16 }
  0x54   : > { %313 = vxpose.xlu0.b32.end [16/16] (narrow) %v297_v29, 16 }
  0x98   : > { %v314_v32 = vpop.trf.xlu0 }
  0x9c   : > { %v315_v33 = vpop.trf.xlu0 }
  0x9d   : > { %v352_v34 = vsel %vm351_vm5, %v315_v33, -inf }
  0x9e   : > { %v353_v35 = vmax.f32 %v314_v32, %v352_v34 }
  0xa0   : > { %v354_v36 = vrot.slane %v353_v35, 4 }
  0xa2   : > { %v355_v37 = vmax.f32 %v353_v35, %v354_v36 }
  0xa3   : > { %v401_v46 = vpop.xlane.xlu1 %400 }
  0xa4   : > { %v356_v38 = vrot.slane %v355_v37, 2  ;;  %406 = vst.msk [vmem:[%s683_s29] sm:$0xff] %vm405_vm6, %v401_v46 }
  0xa6   : > { %v357_v39 = vmax.f32 %v355_v37, %v356_v38 }
  0xa8   : > { %v358_v40 = vrot.slane %v357_v39, 1 }
  0xaa   : > { %v359_v41 = vmax.f32 %v357_v39, %v358_v40 }
  0xac   : > { %v360_v42 = vsub.f32 %v314_v32, %v359_v41  ;;  %v361_v43 = vsub.f32 %v315_v33, %v359_v41 }
  0xae   : > { %v362_v44 = vmul.f32 1.442695, %v360_v42  ;;  %v364_v45 = vmul.f32 1.442695, %v361_v43 }
  0xaf   : > { %v404_v4 = vpop.xlane.xlu1 %403 }
  0xb0   : > { %568 = vpow2.f32 %v362_v44  ;;  %408 = vst.msk [vmem:[%s683_s29 + $0x8] sm:$0x3] %vm407_vm7, %v404_v4 }
  0xb1   : > { %570 = vpow2.f32 %v364_v45 }
  0xba   : > { %v569_v47 = vpop.eup %568 }
  0xbb   : > { %v571_v48 = vpop.eup %570 }
  0xbc   : > { %v366_v49 = vsel %vm351_vm5, %v571_v48, 0.0 }
  0xbd   : > { %v367_v50 = vadd.f32 %v569_v47, %v366_v49 }
  0xbf   : > { %v368_v51 = vrot.slane %v367_v50, 4 }
  0xc1   : > { %v369_v52 = vadd.f32 %v368_v51, %v367_v50 }
  0xc3   : > { %v370_v53 = vrot.slane %v369_v52, 2 }
  0xc5   : > { %v371_v54 = vadd.f32 %v370_v53, %v369_v52 }
  0xc7   : > { %v372_v55 = vrot.slane %v371_v54, 1 }
  0xc9   : > { %v373_v56 = vadd.f32 %v372_v55, %v371_v54 }
  0xcb   : > { %572 = vlog2.f32 %v373_v56 }
  0xd5   : > { %v573_v57 = vpop.eup %572 }
  0xd6   : > { %v375_v58 = vmul.f32 0.6931472, %v573_v57 }
  0xd8   : > { %v376_v59 = vadd.f32 %v375_v58, %v359_v41 }
  0xda   : > { %v387_v61 = vsub.f32 %v376_v59, %v314_v32  ;;  %v388_v62 = vsub.f32 %v376_v59, %v315_v33 }
  0xdc   : > { %v389_v63 = vsel %vm652_vm3, %v387_v61, 0.0  ;;  %v390_v0 = vsel %vm656_vm4, %v388_v62, 0.0 }
  0xdd   : > { %v392_v1 = vadd.f32 %v390_v0, %v386_v60  ;;  %411 = vadd.xlane.f32.xlu1 %v389_v63 }
  0xdf   : > { %394 = vst [vmem:[#allocation3 + $0x8] sm:$0x3] %v392_v1 }
  0xe6   : > { %v410_v2 = vld [vmem:[#allocation3 + $0x8] sm:$0x3] }
  0xe7   : > { %v413_v3 = vsel %vm351_vm5, %v410_v2, 0.0 }
  0xe8   : > { %414 = vadd.xlane.f32.xlu1 %v413_v3 }
 0x16a   : > { %v412_v5 = vpop.xlane.xlu1 %411 }
 0x16b   : > { %416 = vst.msk [vmem:[%s273_s5] sm:$0xff] %vm405_vm6, %v412_v5 }
 0x175   : > { %v415_v6 = vpop.xlane.xlu1 %414 }
 0x176   : > { %417 = vst.msk [vmem:[%s273_s5 + $0x8] sm:$0x3] %vm407_vm7, %v415_v6 }
 0x177 PF: > { %s14_s14 = sadd.s32 1, %s596_s14   ;;  %s716_s12 = smov %s592_s13 }
 0x178   : > { %p11_p6 = scmp.ge.s32.totalorder %s14_s14, 4   ;;  %s717_s13 = smov %s719_s15 }
 0x17a   :  { %13 = sbr.rel (!%p11_p6) target bundleno = 2 (0x2), region = 81 }

// kernel: tpu_custom_call.1
= control target key start
LH: loop header
LB: loop body
LE: loop exit
PB: predicated region body
PF: predicated region fallthrough
CT: control target
= control target key end

     0   :  { %9 = vsyncpa [#allocation5], 0  ;;  %s822_s0 = inlined_call_operand.hbm [shape: f32[10,200], index: 0, kind: input, shape index: {}]   ;;  %s823_s1 = inlined_call_operand.vmem [shape: s32[1,200], index: 1, kind: input, shape index: {}]   ;;  %s824_s2 = inlined_call_operand.vmem [shape: f32[2,10,1], index: 2, kind: output, shape index: {0}]   ;;  %s825_s3 = inlined_call_operand.vmem [shape: f32[2,10,1], index: 3, kind: output, shape index: {1}]  }
   0x1   :  { %11 = vsyncpa [#allocation5 + $0x1], 0  ;;  %s670_s12 = smov 0   ;;  %s672_s13 = smov 0  }
   0x2   :  { %s674_s14 = smov 0   ;;  %s676_s15 = smov 0  }
   0x3   :  { %s678_s16 = smov 0   ;;  %s680_s17 = smov 0  }
   0x4 LB: > { %s477_s18 = sadd.s32 4294967295, %s643_s17   ;;  %s29_s19 = sadd.s32 1, %s639_s16  ;;  %s643_s17 = sphi %s680_s17, %s17_s17   ;;  %s639_s16 = sphi %s678_s16, %s837_s16   ;;  %s635_s15 = sphi %s676_s15, %s836_s15   ;;  %s631_s14 = sphi %s674_s14, %s835_s14   ;;  %s627_s13 = sphi %s672_s13, %s834_s13   ;;  %s623_s12 = sphi %s670_s12, %s833_s12  }
   0x5   : > { %p31_p0 = scmp.ge.s32.totalorder %s29_s19, 2  ;;  %p34_p1 = scmp.lt.s32.totalorder %s639_s16, 1 }
   0x6   : > { %s42_s20 = sadd.s32 1, %s631_s14  ;;  %p49_p2 = scmp.ne.s32.totalorder %s631_s14, %s627_s13 }
   0x7   : > { %s839_s19 = smov (%p31_p0, %s29_s19), 0  ;;  %p50_p4 = scmp.eq.s32.totalorder %s643_s17, 0 }
   0x8   : > { %s35_s21 = scalar_select %p34_p1, %s639_s16, 1 }
   0x9   : > { %p37_p3 = scmp.lt.s32.totalorder %s839_s19, 1  ;;  %p55_p5 = scmp.ne.s32.totalorder %s627_s13, %s623_s12 }
   0xa   : > { %p56_p6 = scmp.eq.s32.totalorder %s477_s18, 0  ;;  %p51_p7 = por %p50_p4, %p49_p2 }
   0xb   : > { %s38_s22 = scalar_select %p37_p3, %s839_s19, 1 }
   0xc   : > { %p711_p8 = por %p56_p6, %p55_p5  ;;  %p504_p10 = scmp.lt.s32.totalorder %s643_s17, 2 }
   0xd   : > { %s39_s24 = ssub.s32 %s35_s21, %s38_s22  ;;  %s163_s25 = sand.u32 1, %s631_s14  }
   0xe   : > { %p40_p9 = scmp.eq.s32.totalorder %s39_s24, 0  ;;  %s482_s26 = sshll.u32 %s35_s21, 7 }
   0xf   : > { %s481_s28 = sshll.u32 %s163_s25, 4  ;;  %s723_s4 = scalar_lea.hbm %s822_s0, %s482_s26 }
  0x10   : > { %s718_s27 = scalar_select %p40_p9, %s631_s14, %s42_s20  }
  0x11   : > { %s167_s5 = scalar_lea.vmem [#allocation4], %s481_s28  ;;  %p725_p11 = pnand %p504_p10, %p51_p7 }
  0x12   : > { %s176_s6 = sshll.u32 %s167_s5, 4  ;;  %s732_s8 = scalar_lea.sflag [#allocation5], %s163_s25  ;;  %s729_s6 = int_to_ptr.vmem [resolvable:$true] %s176_s6 }
  0x13   : > { %s563_s9 = scalar_lea.hbm %s723_s4, 256  ;;  %p565_p0 = pneg %p725_p11 }
  0x14   : > { %p564_p13 = scmp.ne.s32.totalorder %s723_s4, %s563_s9  ;;  %s568_s12 = scalar_lea.hbm %s822_s0, 512 }
  0x15   : > { %p569_p3 = scmp.lt.u32.totalorder %s723_s4, %s822_s0  ;;  %p570_p4 = scmp.lt.u32.totalorder %s568_s12, %s563_s9 }
  0x16   : > { %p566_p1 = pnand %p565_p0, %p564_p13  ;;  %p572_p6 = scmp.lt.u32.totalorder %s563_s9, %s723_s4 }
  0x17   : > { %p571_p5 = por %p570_p4, %p569_p3 }
  0x18   : > { %p567_p2 = pneg %p566_p1 }
  0x19   : > { %p573_p7 = por %p572_p6, %p571_p5 }
  0x1b   : > { %p574_p9 = pnand %p573_p7, %p567_p2 }
  0x1d   : > { %577 = shalt.err (!%p574_p9)
}
  0x1e   : > { %s578_s21 = scalar_lea.vmem %s729_s6, 256  ;;  %s645_s22 = smov [#allocation4]  }
  0x1f   : > { %p579_p10 = scmp.ne.s32.totalorder %s729_s6, %s578_s21  ;;  %s583_s24 = sshll.u32 %s645_s22, 4  ;;  %s584_s24 = int_to_ptr.vmem [resolvable:$false] %s583_s24 }
  0x20   : > { %s585_s25 = scalar_lea.vmem %s584_s24, 512  ;;  %p586_p12 = scmp.lt.s32.totalorder %s729_s6, %s584_s24 }
  0x21   : > { %p581_p13 = pnand %p579_p10, %p565_p0  ;;  %p587_p3 = scmp.lt.s32.totalorder %s585_s25, %s578_s21 }
  0x23   : > { %p582_p1 = pneg %p581_p13  ;;  %p588_p4 = por %p587_p3, %p586_p12 }
  0x25   : > { %p589_p5 = pnand %p588_p4, %p582_p1 }
  0x27   : > { %592 = shalt.err (!%p589_p5)
}
  0x28   : > { %s646_s26 = smov 256   ;;  %s647_s28 = smov 128  }
  0x29   : > { %s648_s29 = smov 8   ;;  %p196_p0 = scmp.lt.s32.totalorder %s643_s17, 3 }
  0x2a   : > { %503 = dma.hbm_to_vmem [thread:$0]  (!%p725_p11), %s723_s4, 256, %s729_s6, %s732_s8, %s646_s26, %s647_s28, %s648_s29  }
  0x2b   : > { %p828_p2 = scmp.ge.s32.totalorder %s643_s17, 1 }
  0x2d   : > { %p197_p6 = pnand %p828_p2, %p196_p0 }
  0x2e   : > { %s202_s30 = sand.u32 (!%p197_p6), 1, %s627_s13  }
  0x2f   : > { %200 = sbr.rel (%p197_p6) target bundleno = 275 (0x113), region = 28  ;;  %s484_s5 = sshll.u32 (!%p197_p6), %s202_s30, 4 }
  0x30   : > { %s203_s9 = scalar_lea.sflag (!%p197_p6), [#allocation5], %s202_s30  ;;  %s206_s10 = scalar_lea.vmem (!%p197_p6), [#allocation4], %s484_s5 }
  0x36   : > { %618 = dma.done.wait (%p711_p8), %s203_s9, 256  }
  0x37   : > { %620 = vsyncadd (%p711_p8), %s203_s9, 4294967040  ;;  %p244_p12 = scmp.lt.s32.totalorder %s635_s15, 1  ;;  %s492_s4 = sshll.u32 %s635_s15, 7  ;;  %v275_v0 = vlaneseq  ;;  %v649_v2 = vmov 0.0   ;;  %vm293_vm0 = vcmask 1041408   ;;  %v270_v7 = vld [vmem:[%s206_s10] sm:$0xff] }
  0x38   : > { %v277_v1 = vstv %s492_s4  ;;  %267 = vst [vmem:[#allocation2 + $0x8] sm:$0x3] %v649_v2  ;;  %269 = vst [vmem:[#allocation3 + $0x8] sm:$0x3] %v649_v2  ;;  %v271_v8 = vld [vmem:[%s206_s10 + $0x8] sm:$0x3] }
  0x39   : > { %s841_s15 = smov (!%p244_p12, %s635_s15), 1  ;;  %v276_v3 = vand.u32 127, %v275_v0  ;;  %v281_v4 = vshrl.u32 %v275_v0, 7  ;;  %v294_v10 = vsel %vm293_vm0, %v271_v8, -inf  ;;  %vm347_vm6 = vcmask 7168  }
  0x3a   : > { %s247_s6 = scalar_select %p244_p12, %s841_s15, 1  ;;  %v295_v12 = vmax.f32 %v270_v7, %v294_v10  ;;  %vm349_vm7 = vcmask 1024  }
  0x3b   : > { %v278_v5 = vadd.s32 %v277_v1, %v276_v3  ;;  %v282_v6 = vadd.s32 8, %v281_v4  ;;  %s496_s11 = sshll.u32 %s841_s15, 4 }
  0x3c   : > { %s248_s8 = scalar_lea.vmem %s823_s1, %s247_s6  ;;  %v296_v16 = vrot.slane %v295_v12, 4  ;;  %s256_s20 = scalar_lea.vmem %s824_s2, %s496_s11 }
  0x3d   : > { %v493_v9 = vld [vmem:[%s248_s8] ss:$0 sm:$0xff]  ;;  %vm279_vm1 = vcmp.lt.s32.totalorder %v278_v5, 200  ;;  %s261_s24 = scalar_lea.vmem %s825_s3, %s496_s11 }
  0x3e   : > { %vm287_vm2 = vcmp.eq.s32.totalorder %v493_v9, %v281_v4  ;;  %vm288_vm3 = vcmp.eq.s32.totalorder %v493_v9, %v282_v6  ;;  %v297_v19 = vmax.f32 %v295_v12, %v296_v16 }
  0x3f   : > { %vm778_vm4 = vmand %vm287_vm2, %vm279_vm1  ;;  %v320_v13 = vld [vmem:[#allocation2 + $0x8] sm:$0x3]  ;;  %v328_v44 = vld [vmem:[#allocation3 + $0x8] sm:$0x3] }
  0x40   : > { %v321_v14 = vsel %vm778_vm4, 1.0, %v649_v2  ;;  %vm784_vm5 = vmand %vm288_vm3, %vm279_vm1  ;;  %v298_v20 = vrot.slane %v297_v19, 2 }
  0x41   : > { %v322_v17 = vsel %vm784_vm5, 1.0, %v649_v2  ;;  %342 = vadd.xlane.f32.xlu0 %v321_v14 }
  0x42   : > { %v324_v18 = vadd.f32 %v322_v17, %v320_v13  ;;  %v299_v21 = vmax.f32 %v297_v19, %v298_v20 }
  0x44   : > { %326 = vst [vmem:[#allocation2 + $0x8] sm:$0x3] %v324_v18  ;;  %v300_v22 = vrot.slane %v299_v21, 1 }
  0x46   : > { %v301_v23 = vmax.f32 %v299_v21, %v300_v22 }
  0x48   : > { %v302_v26 = vsub.f32 %v270_v7, %v301_v23  ;;  %v303_v27 = vsub.f32 %v271_v8, %v301_v23 }
  0x4a   : > { %v304_v28 = vmul.f32 1.442695, %v302_v26  ;;  %v306_v29 = vmul.f32 1.442695, %v303_v27 }
  0x4b   : > { %v341_v24 = vld [vmem:[#allocation2 + $0x8] sm:$0x3] }
  0x4c   : > { %v344_v25 = vsel %vm293_vm0, %v341_v24, 0.0  ;;  %557 = vpow2.f32 %v304_v28 }
  0x4d   : > { %345 = vadd.xlane.f32.xlu0 %v344_v25  ;;  %559 = vpow2.f32 %v306_v29 }
  0x56   : > { %v558_v30 = vpop.eup %557 }
  0x57   : > { %v560_v31 = vpop.eup %559 }
  0x58   : > { %v308_v32 = vsel %vm293_vm0, %v560_v31, 0.0 }
  0x59   : > { %v309_v33 = vadd.f32 %v558_v30, %v308_v32 }
  0x5b   : > { %v310_v34 = vrot.slane %v309_v33, 4 }
  0x5d   : > { %v311_v35 = vadd.f32 %v310_v34, %v309_v33 }
  0x5f   : > { %v312_v36 = vrot.slane %v311_v35, 2 }
  0x61   : > { %v313_v37 = vadd.f32 %v312_v36, %v311_v35 }
  0x63   : > { %v314_v38 = vrot.slane %v313_v37, 1 }
  0x65   : > { %v315_v39 = vadd.f32 %v314_v38, %v313_v37 }
  0x67   : > { %561 = vlog2.f32 %v315_v39 }
  0x71   : > { %v562_v40 = vpop.eup %561 }
  0x72   : > { %v317_v41 = vmul.f32 0.6931472, %v562_v40 }
  0x74   : > { %v318_v42 = vadd.f32 %v317_v41, %v301_v23 }
  0x76   : > { %v329_v43 = vsub.f32 %v318_v42, %v270_v7  ;;  %v330_v45 = vsub.f32 %v318_v42, %v271_v8 }
  0x78   : > { %v331_v46 = vsel %vm778_vm4, %v329_v43, 0.0  ;;  %v332_v47 = vsel %vm784_vm5, %v330_v45, 0.0 }
  0x79   : > { %v334_v48 = vadd.f32 %v332_v47, %v328_v44  ;;  %353 = vadd.xlane.f32.xlu1 %v331_v46 }
  0x7b   : > { %336 = vst [vmem:[#allocation3 + $0x8] sm:$0x3] %v334_v48 }
  0x82   : > { %v352_v49 = vld [vmem:[#allocation3 + $0x8] sm:$0x3] }
  0x83   : > { %v355_v50 = vsel %vm293_vm0, %v352_v49, 0.0 }
  0x84   : > { %356 = vadd.xlane.f32.xlu1 %v355_v50 }
  0xce   : > { %v343_v51 = vpop.xlane.xlu0 %342 }
  0xcf   : > { %348 = vst.msk [vmem:[%s256_s20] sm:$0xff] %vm347_vm6, %v343_v51 }
  0xda   : > { %v346_v52 = vpop.xlane.xlu0 %345 }
  0xdb   : > { %350 = vst.msk [vmem:[%s256_s20 + $0x8] sm:$0x3] %vm349_vm7, %v346_v52 }
 0x106   : > { %v354_v53 = vpop.xlane.xlu1 %353 }
 0x107   : > { %358 = vst.msk [vmem:[%s261_s24] sm:$0xff] %vm347_vm6, %v354_v53 }
 0x111   : > { %v357_v54 = vpop.xlane.xlu1 %356 }
 0x112   : > { %359 = vst.msk [vmem:[%s261_s24 + $0x8] sm:$0x3] %vm349_vm7, %v357_v54 }
 0x113 PF: > { %s17_s17 = sadd.s32 1, %s643_s17   ;;  %s833_s12 = smov %s627_s13 }
 0x114   : > { %p14_p8 = scmp.ge.s32.totalorder %s17_s17, 4   ;;  %s834_s13 = smov %s631_s14 }
 0x115   : > { %s835_s14 = smov %s718_s27  ;;  %s836_s15 = smov %s639_s16 }
 0x116   : > { %s837_s16 = smov %s839_s19  ;;  %16 = sbr.rel (!%p14_p8) target bundleno = 4 (0x4), region = 91 }
 0x11d   :  { %397 = vsyncpa [#allocation5], 1 }
 0x11e   :  { %399 = vsyncpa [#allocation5 + $0x1], 1 }

// kernel: tpu_custom_call.1
= control target key start
LH: loop header
LB: loop body
LE: loop exit
PB: predicated region body
PF: predicated region fallthrough
CT: control target
= control target key end

     0   :  { %9 = vsyncpa [#allocation5], 0  ;;  %s917_s0 = inlined_call_operand.hbm [shape: f32[10,300], index: 0, kind: input, shape index: {}]   ;;  %s918_s1 = inlined_call_operand.vmem [shape: s32[1,300], index: 1, kind: input, shape index: {}]   ;;  %s919_s2 = inlined_call_operand.vmem [shape: f32[2,10,1], index: 2, kind: output, shape index: {0}]   ;;  %s920_s3 = inlined_call_operand.vmem [shape: f32[2,10,1], index: 3, kind: output, shape index: {1}]  }
   0x1   :  { %11 = vsyncpa [#allocation5 + $0x1], 0  ;;  %s729_s12 = smov 0   ;;  %s731_s13 = smov 0  }
   0x2   :  { %s733_s14 = smov 0   ;;  %s735_s15 = smov 0  }
   0x3   :  { %s737_s16 = smov 0   ;;  %s739_s17 = smov 0  }
   0x4   :  { %s741_s18 = smov 0   ;;  %s743_s19 = smov 0  }
   0x5 LB: > { %s493_s20 = sadd.s32 4294967295, %s701_s19   ;;  %s26_s21 = sadd.s32 1, %s693_s17  ;;  %s701_s19 = sphi %s743_s19, %s17_s19   ;;  %s697_s18 = sphi %s741_s18, %s935_s18   ;;  %s693_s17 = sphi %s739_s17, %s934_s17   ;;  %s689_s16 = sphi %s737_s16, %s933_s16   ;;  %s685_s15 = sphi %s735_s15, %s932_s15   ;;  %s681_s14 = sphi %s733_s14, %s931_s14   ;;  %s677_s13 = sphi %s731_s13, %s930_s13   ;;  %s673_s12 = sphi %s729_s12, %s929_s12  }
   0x6   : > { %p27_p0 = scmp.ge.s32.totalorder %s26_s21, 2  ;;  %s29_s22 = sadd.s32 1, %s697_s18 }
   0x7   : > { %s495_s23 = sshll.u32 %s697_s18, 1  ;;  %s44_s24 = sadd.s32 1, %s681_s14 }
   0x8   : > { %s937_s21 = smov (%p27_p0, %s26_s21), 0  ;;  %s939_s22 = smov (!%p27_p0, %s29_s22), %s697_s18 }
   0x9   : > { %s34_s25 = sadd.s32 %s693_s17, %s495_s23  ;;  %p51_p1 = scmp.ne.s32.totalorder %s681_s14, %s677_s13 }
   0xa   : > { %p31_p2 = scmp.ge.s32.totalorder %s939_s22, 2  ;;  %p35_p3 = scmp.lt.s32.totalorder %s34_s25, 2 }
   0xb   : > { %p52_p4 = scmp.eq.s32.totalorder %s701_s19, 0  ;;  %p57_p5 = scmp.ne.s32.totalorder %s677_s13, %s673_s12 }
   0xc   : > { %s941_s22 = smov (%p31_p2, %s939_s22), 0  ;;  %s943_s25 = smov (!%p35_p3, %s34_s25), 2 }
   0xd   : > { %s496_s26 = sshll.u32 %s941_s22, 1  ;;  %p783_p6 = por %p52_p4, %p51_p1 }
   0xe   : > { %s38_s28 = sadd.s32 %s496_s26, %s937_s21  ;;  %p58_p7 = scmp.eq.s32.totalorder %s493_s20, 0 }
   0xf   : > { %p39_p8 = scmp.lt.s32.totalorder %s38_s28, 2  ;;  %p529_p10 = scmp.lt.s32.totalorder %s701_s19, 4 }
  0x10   : > { %p788_p9 = por %p58_p7, %p57_p5  ;;  %s167_s30 = sand.u32 1, %s681_s14  }
  0x11   : > { %s945_s28 = smov (!%p39_p8, %s38_s28), 2  ;;  %s503_s4 = sshll.u32 %s943_s25, 7 }
  0x12   : > { %s41_s5 = ssub.s32 %s943_s25, %s945_s28  ;;  %s501_s6 = sshll.u32 %s167_s30, 4 }
  0x13   : > { %p42_p11 = scmp.eq.s32.totalorder %s41_s5, 0  ;;  %s797_s9 = scalar_lea.hbm %s917_s0, %s503_s4 }
  0x14   : > { %s171_s11 = scalar_lea.vmem [#allocation4], %s501_s6  ;;  %p804_p12 = pnand %p529_p10, %p783_p6 }
  0x15   : > { %s800_s10 = scalar_select %p42_p11, %s681_s14, %s44_s24  }
  0x16   : > { %s181_s12 = sshll.u32 %s171_s11, 4  ;;  %s811_s23 = scalar_lea.sflag [#allocation5], %s167_s30  ;;  %s808_s12 = int_to_ptr.vmem [resolvable:$true] %s181_s12 }
  0x17   : > { %s605_s25 = scalar_lea.hbm %s797_s9, 256  ;;  %p607_p1 = pneg %p804_p12 }
  0x18   : > { %p606_p0 = scmp.ne.s32.totalorder %s797_s9, %s605_s25  ;;  %s610_s27 = scalar_lea.hbm %s917_s0, 768 }
  0x19   : > { %p611_p4 = scmp.lt.u32.totalorder %s797_s9, %s917_s0  ;;  %p612_p5 = scmp.lt.u32.totalorder %s610_s27, %s605_s25 }
  0x1a   : > { %p608_p2 = pnand %p607_p1, %p606_p0  ;;  %p614_p7 = scmp.lt.u32.totalorder %s605_s25, %s797_s9 }
  0x1b   : > { %p613_p6 = por %p612_p5, %p611_p4 }
  0x1c   : > { %p609_p3 = pneg %p608_p2 }
  0x1d   : > { %p615_p8 = por %p614_p7, %p613_p6 }
  0x1f   : > { %p616_p10 = pnand %p615_p8, %p609_p3 }
  0x21   : > { %619 = shalt.err (!%p616_p10)
}
  0x22   : > { %s620_s30 = scalar_lea.vmem %s808_s12, 256  ;;  %s703_s5 = smov [#allocation4]  }
  0x23   : > { %p621_p11 = scmp.ne.s32.totalorder %s808_s12, %s620_s30  ;;  %s625_s6 = sshll.u32 %s703_s5, 4  ;;  %s626_s6 = int_to_ptr.vmem [resolvable:$false] %s625_s6 }
  0x24   : > { %s627_s7 = scalar_lea.vmem %s626_s6, 512  ;;  %p628_p13 = scmp.lt.s32.totalorder %s808_s12, %s626_s6 }
  0x25   : > { %p623_p0 = pnand %p621_p11, %p607_p1  ;;  %p629_p4 = scmp.lt.s32.totalorder %s627_s7, %s620_s30 }
  0x27   : > { %p624_p2 = pneg %p623_p0  ;;  %p630_p5 = por %p629_p4, %p628_p13 }
  0x29   : > { %p631_p6 = pnand %p630_p5, %p624_p2 }
  0x2b   : > { %634 = shalt.err (!%p631_p6)
}
  0x2c   : > { %s704_s8 = smov 384   ;;  %s705_s11 = smov 128  }
  0x2d   : > { %s706_s25 = smov 8   ;;  %p203_p1 = scmp.lt.s32.totalorder %s701_s19, 5 }
  0x2e   : > { %528 = dma.hbm_to_vmem [thread:$0]  (!%p804_p12), %s797_s9, 256, %s808_s12, %s811_s23, %s704_s8, %s705_s11, %s706_s25  }
  0x2f   : > { %p924_p3 = scmp.ge.s32.totalorder %s701_s19, 1 }
  0x31   : > { %p204_p7 = pnand %p924_p3, %p203_p1 }
  0x32   : > { %s209_s24 = sand.u32 (!%p204_p7), 1, %s677_s13  }
  0x33   : > { %207 = sbr.rel (%p204_p7) target bundleno = 291 (0x123), region = 28  ;;  %s843_s26 = sshll.u32 (!%p204_p7), %s209_s24, 4 }
  0x34   : > { %s210_s27 = scalar_lea.sflag (!%p204_p7), [#allocation5], %s209_s24  ;;  %s213_s28 = scalar_lea.vmem (!%p204_p7), [#allocation4], %s843_s26 }
  0x3a   : > { %668 = dma.done.wait (%p788_p9), %s210_s27, 256  }
  0x3b   : > { %670 = vsyncadd (%p788_p9), %s210_s27, 4294967040  ;;  %s506_s9 = sshll.u32 %s689_s16, 1  ;;  %p263_p12 = scmp.lt.s32.totalorder %s689_s16, 1 }
  0x3c   : > { %s253_s12 = sadd.s32 %s685_s15, %s506_s9  ;;  %p514_p9 = scmp.ne.s32.totalorder %s685_s15, 0 }
  0x3d   : > { %p254_p13 = scmp.lt.s32.totalorder %s253_s12, 2  ;;  %s947_s16 = smov (!%p263_p12, %s689_s16), 1  ;;  %v707_v0 = vmov (!%p514_p9), 0.0  }
  0x3e   : > { %s521_s23 = sshll.u32 %s947_s16, 4  ;;  %276 = sbr.rel (%p514_p9) target bundleno = 69 (0x45), region = 36  ;;  %277 = vst [vmem:[#allocation2] sm:$0xff] (!%p514_p9), %v707_v0  ;;  %278 = vst [vmem:[#allocation2 + $0x8] sm:$0x3] (!%p514_p9), %v707_v0 }
  0x3f   : > { %s255_s20 = scalar_select %p254_p13, %s253_s12, 2 }
  0x40   : > { %s857_s5 = scalar_lea.vmem %s919_s2, %s521_s23  ;;  %s862_s7 = scalar_lea.vmem %s920_s3, %s521_s23  ;;  %279 = vst [vmem:[#allocation3] sm:$0xff] (!%p514_p9), %v707_v0  ;;  %280 = vst [vmem:[#allocation3 + $0x8] sm:$0x3] (!%p514_p9), %v707_v0 }
  0x41   : > { %s949_s20 = smov (!%p254_p13, %s255_s20), 2 }
  0x42   : > { %s258_s25 = scalar_lea.vmem %s918_s1, %s949_s20 }
  0x45 PF: > { %s516_s16 = sshll.u32 %s253_s12, 7  ;;  %v287_v1 = vlaneseq  ;;  %v281_v2 = vld [vmem:[%s213_s28] sm:$0xff]  ;;  %v282_v5 = vld [vmem:[%s213_s28 + $0x8] sm:$0x3]  ;;  %vm305_vm0 = vcmask 1041408   ;;  %v708_v17 = vmov 0.0  }
  0x46   : > { %v517_v3 = vld [vmem:[%s258_s25] ss:$0 sm:$0xff]  ;;  %v289_v4 = vstv %s516_s16  ;;  %v306_v8 = vsel %vm305_vm0, %v282_v5, -inf  ;;  %v332_v15 = vld [vmem:[#allocation2 + $0x8] sm:$0x3]  ;;  %p518_p8 = scmp.ne.s32.totalorder %s685_s15, 1 }
  0x47   : > { %v288_v6 = vand.u32 127, %v287_v1  ;;  %v293_v7 = vshrl.u32 %v287_v1, 7  ;;  %v307_v9 = vmax.f32 %v281_v2, %v306_v8  ;;  %v331_v13 = vld [vmem:[#allocation2] sm:$0xff]  ;;  %v339_v44 = vld [vmem:[#allocation3] sm:$0xff]  ;;  %v340_v46 = vld [vmem:[#allocation3 + $0x8] sm:$0x3] }
  0x48   : > { %vm360_vm6 = vcmask (!%p518_p8), 7168   ;;  %vm362_vm7 = vcmask (!%p518_p8), 1024  }
  0x49   : > { %v290_v10 = vadd.s32 %v289_v4, %v288_v6  ;;  %vm299_vm1 = vcmp.eq.s32.totalorder %v517_v3, %v293_v7  ;;  %v294_v11 = vadd.s32 8, %v293_v7  ;;  %v308_v12 = vrot.slane %v307_v9, 4 }
  0x4b   : > { %vm291_vm2 = vcmp.lt.s32.totalorder %v290_v10, 300  ;;  %vm300_vm3 = vcmp.eq.s32.totalorder %v517_v3, %v294_v11  ;;  %v309_v16 = vmax.f32 %v307_v9, %v308_v12 }
  0x4c   : > { %vm869_vm4 = vmand %vm299_vm1, %vm291_vm2 }
  0x4d   : > { %v333_v18 = vsel %vm869_vm4, 1.0, %v708_v17  ;;  %vm875_vm5 = vmand %vm300_vm3, %vm291_vm2  ;;  %v310_v22 = vrot.slane %v309_v16, 2 }
  0x4e   : > { %v335_v20 = vadd.f32 %v333_v18, %v331_v13  ;;  %v334_v21 = vsel %vm875_vm5, 1.0, %v708_v17 }
  0x4f   : > { %v336_v23 = vadd.f32 %v334_v21, %v332_v15  ;;  %v311_v24 = vmax.f32 %v309_v16, %v310_v22 }
  0x50   : > { %337 = vst [vmem:[#allocation2] sm:$0xff] %v335_v20 }
  0x51   : > { %338 = vst [vmem:[#allocation2 + $0x8] sm:$0x3] %v336_v23  ;;  %v312_v25 = vrot.slane %v311_v24, 1 }
  0x53   : > { %v313_v26 = vmax.f32 %v311_v24, %v312_v25 }
  0x55   : > { %v314_v27 = vsub.f32 %v281_v2, %v313_v26  ;;  %v315_v28 = vsub.f32 %v282_v5, %v313_v26 }
  0x57   : > { %v316_v29 = vmul.f32 1.442695, %v314_v27  ;;  %v318_v30 = vmul.f32 1.442695, %v315_v28  ;;  %v353_v53 = vld [vmem:[#allocation2] sm:$0xff] (!%p518_p8) }
  0x58   : > { %355 = vadd.xlane.f32.xlu0 (!%p518_p8), %v353_v53  ;;  %v354_v55 = vld [vmem:[#allocation2 + $0x8] sm:$0x3] (!%p518_p8) }
  0x59   : > { %599 = vpow2.f32 %v316_v29  ;;  %v357_v57 = vsel (!%p518_p8), %vm305_vm0, %v354_v55, 0.0 }
  0x5a   : > { %601 = vpow2.f32 %v318_v30 }
  0x5c   : > { %358 = vadd.xlane.f32.xlu0 (!%p518_p8), %v357_v57 }
  0x63   : > { %v600_v31 = vpop.eup %599 }
  0x64   : > { %v602_v32 = vpop.eup %601 }
  0x65   : > { %v320_v33 = vsel %vm305_vm0, %v602_v32, 0.0 }
  0x66   : > { %v321_v34 = vadd.f32 %v600_v31, %v320_v33 }
  0x68   : > { %v322_v35 = vrot.slane %v321_v34, 4 }
  0x6a   : > { %v323_v36 = vadd.f32 %v322_v35, %v321_v34 }
  0x6c   : > { %v324_v37 = vrot.slane %v323_v36, 2 }
  0x6e   : > { %v325_v38 = vadd.f32 %v324_v37, %v323_v36 }
  0x70   : > { %v326_v39 = vrot.slane %v325_v38, 1 }
  0x72   : > { %v327_v40 = vadd.f32 %v326_v39, %v325_v38 }
  0x74   : > { %603 = vlog2.f32 %v327_v40 }
  0x7e   : > { %v604_v41 = vpop.eup %603 }
  0x7f   : > { %v329_v42 = vmul.f32 0.6931472, %v604_v41 }
  0x81   : > { %v330_v43 = vadd.f32 %v329_v42, %v313_v26 }
  0x82   : > { %352 = sbr.rel (%p518_p8) target bundleno = 291 (0x123), region = 40 }
  0x83   : > { %v341_v45 = vsub.f32 %v330_v43, %v281_v2  ;;  %v342_v47 = vsub.f32 %v330_v43, %v282_v5 }
  0x85   : > { %v343_v48 = vsel %vm869_vm4, %v341_v45, 0.0  ;;  %v344_v49 = vsel %vm875_vm5, %v342_v47, 0.0 }
  0x86   : > { %v345_v50 = vadd.f32 %v343_v48, %v339_v44  ;;  %v346_v51 = vadd.f32 %v344_v49, %v340_v46 }
  0x88   : > { %347 = vst [vmem:[#allocation3] sm:$0xff] %v345_v50  ;;  %348 = vst [vmem:[#allocation3 + $0x8] sm:$0x3] %v346_v51 }
  0x8f   : > { %v364_v52 = vld [vmem:[#allocation3] sm:$0xff]  ;;  %v365_v54 = vld [vmem:[#allocation3 + $0x8] sm:$0x3] }
  0x90   : > { %366 = vadd.xlane.f32.xlu1 %v364_v52  ;;  %v368_v56 = vsel %vm305_vm0, %v365_v54, 0.0 }
  0x94   : > { %369 = vadd.xlane.f32.xlu1 %v368_v56 }
  0xe5   : > { %v356_v59 = vpop.xlane.xlu0 %355 }
  0xe6   : > { %361 = vst.msk [vmem:[%s857_s5] sm:$0xff] %vm360_vm6, %v356_v59 }
  0xe9   : > { %v359_v61 = vpop.xlane.xlu0 %358 }
  0xea   : > { %363 = vst.msk [vmem:[%s857_s5 + $0x8] sm:$0x3] %vm362_vm7, %v359_v61 }
 0x11d   : > { %v367_v58 = vpop.xlane.xlu1 %366 }
 0x11e   : > { %371 = vst.msk [vmem:[%s862_s7] sm:$0xff] %vm360_vm6, %v367_v58 }
 0x121   : > { %v370_v60 = vpop.xlane.xlu1 %369 }
 0x122   : > { %372 = vst.msk [vmem:[%s862_s7 + $0x8] sm:$0x3] %vm362_vm7, %v370_v60 }
 0x123 PF: > { %s17_s19 = sadd.s32 1, %s701_s19   ;;  %s929_s12 = smov %s677_s13 }
 0x124   : > { %p14_p10 = scmp.ge.s32.totalorder %s17_s19, 6   ;;  %s930_s13 = smov %s681_s14 }
 0x125   : > { %s931_s14 = smov %s800_s10  ;;  %s932_s15 = smov %s693_s17 }
 0x126   : > { %s933_s16 = smov %s697_s18  ;;  %s934_s17 = smov %s937_s21 }
 0x127   : > { %s935_s18 = smov %s941_s22  ;;  %16 = sbr.rel (!%p14_p10) target bundleno = 5 (0x5), region = 91 }
 0x12e   :  { %410 = vsyncpa [#allocation5], 1 }
 0x12f   :  { %412 = vsyncpa [#allocation5 + $0x1], 1 }

</bundles_post_ra>
